<compile_context>
chip_gen: v6e
topology: v6e:2x2x1
jax: 0.10.0
libtpu: 0.0.40
codegen_flags: <defaults>
</compile_context>

<pallas_src>
import jax
import jax.numpy as jnp
from jax.experimental import pallas as pl
from jax.experimental.pallas import tpu as pltpu

BN_EPS = 1e-5
LANE = 128
TM_MAX = 512                       # rows per M-tile (multiple of 16 for bf16 stores)
VMEM_LIMIT = 48 * 1024 * 1024      # < v7x's 64 MiB physical VMEM, > default scoped limit


def _round_up(a, b):
    return (a + b - 1) // b * b


# ---------------------------------------------------------------------------
# Pallas kernels
# ---------------------------------------------------------------------------
def _matmul_stats_kernel(p_ref, w_ref, y_ref, s_ref):
    # p_ref: (1, tm, K) bf16, w_ref: (1, K, Cop) bf16
    # y_ref: (1, tm, Cop) f32, s_ref: (1, 8, Cop) f32 (row0 = sum, row1 = sumsq)
    acc = jnp.dot(p_ref[0], w_ref[0], preferred_element_type=jnp.float32)
    y_ref[0] = acc
    s1 = jnp.sum(acc, axis=0, keepdims=True)
    s2 = jnp.sum(acc * acc, axis=0, keepdims=True)
    pad = jnp.zeros((6, acc.shape[1]), jnp.float32)
    s_ref[0] = jnp.concatenate([s1, s2, pad], axis=0)


def _matmul_tanh_kernel(p_ref, w_ref, y_ref):
    acc = jnp.dot(p_ref[0], w_ref[0], preferred_element_type=jnp.float32)
    y_ref[0] = jnp.tanh(acc)


def _bn_relu_kernel(y_ref, sc_ref, sh_ref, o_ref):
    # y_ref: (1, tm, Cop) f32; sc/sh: (1, Cop) f32; o_ref: (1, tm, Cop) bf16
    y = y_ref[0]
    o_ref[0] = jnp.maximum(y * sc_ref[...] + sh_ref[...], 0.0).astype(o_ref.dtype)


# ---------------------------------------------------------------------------
# pallas_call wrappers
# ---------------------------------------------------------------------------
def _cparams():
    return pltpu.CompilerParams(
        dimension_semantics=("parallel", "parallel"),
        vmem_limit_bytes=VMEM_LIMIT)


def _matmul_stats_call(patches, w, tm):
    P, Mp, K = patches.shape
    Cop = w.shape[2]
    MT = Mp // tm
    cost = pl.CostEstimate(
        flops=2 * P * Mp * K * Cop, transcendentals=0,
        bytes_accessed=patches.size * 2 + w.size * 2
                       + P * Mp * Cop * 4 + P * MT * 8 * Cop * 4)
    return pl.pallas_call(
        _matmul_stats_kernel,
        out_shape=(jax.ShapeDtypeStruct((P, Mp, Cop), jnp.float32),
                   jax.ShapeDtypeStruct((P * MT, 8, Cop), jnp.float32)),
        grid_spec=pltpu.PrefetchScalarGridSpec(
            num_scalar_prefetch=0,
            grid=(P, MT),
            in_specs=[pl.BlockSpec((1, tm, K), lambda p, m: (p, m, 0)),
                      pl.BlockSpec((1, K, Cop), lambda p, m: (p, 0, 0))],
            out_specs=(pl.BlockSpec((1, tm, Cop), lambda p, m: (p, m, 0)),
                       pl.BlockSpec((1, 8, Cop), lambda p, m: (p * MT + m, 0, 0)))),
        compiler_params=_cparams(),
        cost_estimate=cost,
    )(patches, w)


def _matmul_tanh_call(patches, w, tm):
    P, Mp, K = patches.shape
    Cop = w.shape[2]
    MT = Mp // tm
    cost = pl.CostEstimate(
        flops=2 * P * Mp * K * Cop, transcendentals=P * Mp * Cop,
        bytes_accessed=patches.size * 2 + w.size * 2 + P * Mp * Cop * 4)
    return pl.pallas_call(
        _matmul_tanh_kernel,
        out_shape=jax.ShapeDtypeStruct((P, Mp, Cop), jnp.float32),
        grid_spec=pltpu.PrefetchScalarGridSpec(
            num_scalar_prefetch=0,
            grid=(P, MT),
            in_specs=[pl.BlockSpec((1, tm, K), lambda p, m: (p, m, 0)),
                      pl.BlockSpec((1, K, Cop), lambda p, m: (p, 0, 0))],
            out_specs=pl.BlockSpec((1, tm, Cop), lambda p, m: (p, m, 0))),
        compiler_params=_cparams(),
        cost_estimate=cost,
    )(patches, w)


def _bn_relu_call(y, scale, shift, tm):
    P, Mp, Cop = y.shape
    MT = Mp // tm
    cost = pl.CostEstimate(
        flops=2 * P * Mp * Cop, transcendentals=0,
        bytes_accessed=y.size * 4 + 2 * Cop * 4 + P * Mp * Cop * 2)
    return pl.pallas_call(
        _bn_relu_kernel,
        out_shape=jax.ShapeDtypeStruct((P, Mp, Cop), jnp.bfloat16),
        grid_spec=pltpu.PrefetchScalarGridSpec(
            num_scalar_prefetch=0,
            grid=(P, MT),
            in_specs=[pl.BlockSpec((1, tm, Cop), lambda p, m: (p, m, 0)),
                      pl.BlockSpec((1, Cop), lambda p, m: (0, 0)),
                      pl.BlockSpec((1, Cop), lambda p, m: (0, 0))],
            out_specs=pl.BlockSpec((1, tm, Cop), lambda p, m: (p, m, 0))),
        compiler_params=_cparams(),
        cost_estimate=cost,
    )(y, scale, shift)


# ---------------------------------------------------------------------------
# Per-layer runners (padding to lane-dense Cop and 16-aligned M tiles)
# ---------------------------------------------------------------------------
def _pad_operands(patches, w):
    P, M, K = patches.shape
    Co = w.shape[2]
    Cop = _round_up(Co, LANE)
    tm = min(TM_MAX, _round_up(M, 16))
    Mp = _round_up(M, tm)
    p_b = jnp.pad(patches, ((0, 0), (0, Mp - M), (0, 0))).astype(jnp.bfloat16)
    w_b = jnp.pad(w, ((0, 0), (0, 0), (0, Cop - Co))).astype(jnp.bfloat16)
    return p_b, w_b, tm, Cop


def _run_matmul_bn_relu(patches, w, gamma, beta):
    """patches (P, M, K), w (P, K, Co) -> bf16 activations (P, M, Co)."""
    P, M, _ = patches.shape
    Co = w.shape[2]
    p_b, w_b, tm, Cop = _pad_operands(patches, w)
    y, stats = _matmul_stats_call(p_b, w_b, tm)
    # Global train-mode BN statistics (zero-padded rows contribute nothing).
    count = float(P * M)
    s1 = jnp.sum(stats[:, 0, :], axis=0)
    s2 = jnp.sum(stats[:, 1, :], axis=0)
    mean = s1 / count
    var = jnp.maximum(s2 / count - mean * mean, 0.0)   # biased var (PyTorch train fwd)
    inv = jax.lax.rsqrt(var + BN_EPS)
    g = jnp.pad(gamma.astype(jnp.float32), (0, Cop - Co))
    b = jnp.pad(beta.astype(jnp.float32), (0, Cop - Co))
    scale = (g * inv).reshape(1, Cop)
    shift = (b - mean * g * inv).reshape(1, Cop)
    act = _bn_relu_call(y, scale, shift, tm)
    return act[:, :M, :Co]


def _run_matmul_tanh(patches, w):
    P, M, _ = patches.shape
    Co = w.shape[2]
    p_b, w_b, tm, _ = _pad_operands(patches, w)
    y = _matmul_tanh_call(p_b, w_b, tm)
    return y[:, :M, :Co]


# ---------------------------------------------------------------------------
# JAX glue: phase decompositions / im2col / output assembly (no zero stuffing)
# ---------------------------------------------------------------------------
def _convt_first_patches(x, wT):
    # ConvTranspose2d(Ci, Co, 4, 1, 0) on a 1x1 input: 16 per-pixel matmuls.
    N, H, W, Ci = x.shape
    assert H == 1 and W == 1, "initial decoder layer expects a 1x1 latent"
    _, Co, KH, KW = wT.shape
    P = KH * KW
    xf = x.reshape(N, Ci)
    patches = jnp.broadcast_to(xf[None], (P, N, Ci))
    w = jnp.transpose(wT, (2, 3, 0, 1)).reshape(P, Ci, Co)   # phase p = kh*KW + kw
    return patches, w


def _convt_first_assemble(y, N, KH, KW, Co):
    # y: (KH*KW, N, Co) -> (N, KH, KW, Co)
    return jnp.transpose(y.reshape(KH, KW, N, Co), (2, 0, 1, 3))


def _convt_s2_patches(x, wT):
    # ConvTranspose2d(Ci, Co, 4, 2, 1): 4-phase decomposition on the undilated input.
    # out[n, 2m+r, 2j+c, co] = sum_{dy,dx,ci} xpad_rc[n, m+dy, j+dx, ci]
    #                                        * wT[ci, co, 3-r-2dy, 3-c-2dx]
    N, H, W, Ci = x.shape
    _, Co, _, _ = wT.shape
    M = N * H * W
    pats, ws = [], []
    for r in (0, 1):
        for c in (0, 1):
            xp = jnp.pad(x, ((0, 0),
                             (1, 0) if r == 0 else (0, 1),
                             (1, 0) if c == 0 else (0, 1),
                             (0, 0)))
            cols = [xp[:, dy:dy + H, dx:dx + W, :] for dy in (0, 1) for dx in (0, 1)]
            pats.append(jnp.stack(cols, axis=3).reshape(M, 4 * Ci))
            taps = [wT[:, :, 3 - r - 2 * dy, 3 - c - 2 * dx]
                    for dy in (0, 1) for dx in (0, 1)]
            ws.append(jnp.stack(taps, axis=0).reshape(4 * Ci, Co))
    return jnp.stack(pats, axis=0), jnp.stack(ws, axis=0)   # (4, M, 4Ci), (4, 4Ci, Co)


def _convt_s2_assemble(y, N, H, W, Co):
    # y: (4, N*H*W, Co) with phase p = r*2 + c  ->  (N, 2H, 2W, Co)
    y6 = y.reshape(2, 2, N, H, W, Co)
    return jnp.transpose(y6, (2, 3, 0, 4, 1, 5)).reshape(N, 2 * H, 2 * W, Co)


def _conv3_patches(x, w):
    # Conv2d(Ci, Co, 3, 1, 1) -> classic im2col, single phase.
    N, H, W, Ci = x.shape
    Co, _, KH, KW = w.shape
    xp = jnp.pad(x, ((0, 0), (1, 1), (1, 1), (0, 0)))
    cols = [xp[:, kh:kh + H, kw:kw + W, :] for kh in range(KH) for kw in range(KW)]
    patches = jnp.stack(cols, axis=3).reshape(1, N * H * W, KH * KW * Ci)
    w2 = jnp.transpose(w, (2, 3, 1, 0)).reshape(1, KH * KW * Ci, Co)
    return patches, w2


# ---------------------------------------------------------------------------
# Decoder: parameter construction + forward
# ---------------------------------------------------------------------------
def build_decoder_params(key, isize, nz, nc, ngf, n_extra_layers=0):
    assert isize % 16 == 0, "isize has to be a multiple of 16"
    cngf, tisize = ngf // 2, 4
    while tisize != isize:
        cngf *= 2
        tisize *= 2

    keys = iter(jax.random.split(key, 64))

    def w_init(shape):
        return 0.02 * jax.random.normal(next(keys), shape, jnp.float32)

    def bn_init(c):
        g = 1.0 + 0.1 * jax.random.normal(next(keys), (c,), jnp.float32)
        b = 0.1 * jax.random.normal(next(keys), (c,), jnp.float32)
        return g, b

    layers = []
    g, b = bn_init(cngf)
    layers.append(dict(kind="convt_first", w=w_init((nz, cngf, 4, 4)),
                       gamma=g, beta=b, act="bn_relu"))
    csize = 4
    while csize < isize // 2:
        g, b = bn_init(cngf // 2)
        layers.append(dict(kind="convt_s2", w=w_init((cngf, cngf // 2, 4, 4)),
                           gamma=g, beta=b, act="bn_relu"))
        cngf //= 2
        csize *= 2
    for _ in range(n_extra_layers):
        g, b = bn_init(cngf)
        layers.append(dict(kind="conv3", w=w_init((cngf, cngf, 3, 3)),
                           gamma=g, beta=b, act="bn_relu"))
    layers.append(dict(kind="convt_s2", w=w_init((cngf, nc, 4, 4)), act="tanh"))
    return layers


def decoder_forward(x_nchw, layers):
    # NCHW (PyTorch) -> NHWC (kernel layout)
    x = jnp.transpose(x_nchw, (0, 2, 3, 1)).astype(jnp.float32)
    N = x.shape[0]
    for layer in layers:
        kind = layer["kind"]
        if kind == "convt_first":
            patches, w = _convt_first_patches(x, layer["w"])
            Co = layer["w"].shape[1]
            act = _run_matmul_bn_relu(patches, w, layer["gamma"], layer["beta"])
            x = _convt_first_assemble(act, N, 4, 4, Co)
        elif kind == "convt_s2":
            H, W = x.shape[1], x.shape[2]
            patches, w = _convt_s2_patches(x, layer["w"])
            Co = layer["w"].shape[1]
            if layer["act"] == "bn_relu":
                act = _run_matmul_bn_relu(patches, w, layer["gamma"], layer["beta"])
            else:
                act = _run_matmul_tanh(patches, w)
            x = _convt_s2_assemble(act, N, H, W, Co)
        else:  # conv3
            H, W = x.shape[1], x.shape[2]
            patches, w = _conv3_patches(x, layer["w"])
            Co = layer["w"].shape[0]
            act = _run_matmul_bn_relu(patches, w, layer["gamma"], layer["beta"])
            x = act.reshape(N, H, W, Co)
    # NHWC -> NCHW to match the PyTorch module's output convention
    return jnp.transpose(x, (0, 3, 1, 2)).astype(jnp.float32)


# ---------------------------------------------------------------------------
if __name__ == "__main__":
    key = jax.random.PRNGKey(0)
    isize, nz, nc, ngf = 16, 8, 3, 8
    batch = 2
    pkey, xkey = jax.random.split(key)

    layers = build_decoder_params(pkey, isize, nz, nc, ngf, n_extra_layers=1)
    x = jax.random.normal(xkey, (batch, nz, 1, 1), jnp.float32)

    fwd = jax.jit(lambda inp: decoder_forward(inp, layers))
    out = jax.block_until_ready(fwd(x))

    assert out.shape == (batch, nc, isize, isize), out.shape
    assert bool(jnp.all(jnp.isfinite(out)))
    assert bool(jnp.all(jnp.abs(out) <= 1.0 + 1e-6))  # tanh output range
    print("KERNEL_OK")
</pallas_src>

<mosaic_0001>
module attributes {stable_mosaic.version = 11 : i64} {
  func.func @_bn_relu_kernel(%arg0: i32, %arg1: i32, %arg2: memref<1x16x128xf32, #tpu.memory_space<vmem>>, %arg3: memref<1x128xf32, #tpu.memory_space<vmem>>, %arg4: memref<1x128xf32, #tpu.memory_space<vmem>>, %arg5: memref<1x16x128xbf16, #tpu.memory_space<vmem>>) attributes {dimension_semantics = [#tpu.dimension_semantics<parallel>, #tpu.dimension_semantics<parallel>], iteration_bounds = array<i64: 16, 1>, scalar_prefetch = 0 : i64, scratch_operands = 0 : i64, tpu.core_type = #tpu.core_type<tc>, window_params = [{transform_indices = @transform_0, window_bounds = array<i64: 1, 16, 128>}, {pipeline_mode = #tpu.pipeline_mode<synchronous>, transform_indices = @transform_1, window_bounds = array<i64: 1, 128>}, {pipeline_mode = #tpu.pipeline_mode<synchronous>, transform_indices = @transform_2, window_bounds = array<i64: 1, 128>}, {transform_indices = @transform_3, window_bounds = array<i64: 1, 16, 128>}]} {
    %c0 = arith.constant 0 : index
    %c0_0 = arith.constant 0 : index
    %c0_1 = arith.constant 0 : index
    %0 = vector.load %arg2[%c0, %c0_0, %c0_1] : memref<1x16x128xf32, #tpu.memory_space<vmem>>, vector<1x16x128xf32>
    %1 = vector.shape_cast %0 : vector<1x16x128xf32> to vector<16x128xf32>
    %c0_2 = arith.constant 0 : index
    %c0_3 = arith.constant 0 : index
    %2 = vector.load %arg3[%c0_2, %c0_3] : memref<1x128xf32, #tpu.memory_space<vmem>>, vector<1x128xf32>
    %3 = vector.broadcast %2 : vector<1x128xf32> to vector<16x128xf32>
    %4 = arith.mulf %1, %3 : vector<16x128xf32>
    %c0_4 = arith.constant 0 : index
    %c0_5 = arith.constant 0 : index
    %5 = vector.load %arg4[%c0_4, %c0_5] : memref<1x128xf32, #tpu.memory_space<vmem>>, vector<1x128xf32>
    %6 = vector.broadcast %5 : vector<1x128xf32> to vector<16x128xf32>
    %7 = arith.addf %4, %6 : vector<16x128xf32>
    %cst = arith.constant 0.000000e+00 : f32
    %8 = vector.broadcast %cst : f32 to vector<16x128xf32>
    %9 = arith.maximumf %7, %8 : vector<16x128xf32>
    %10 = arith.truncf %9 : vector<16x128xf32> to vector<16x128xbf16>
    %c0_6 = arith.constant 0 : index
    %c0_7 = arith.constant 0 : index
    %c0_8 = arith.constant 0 : index
    %11 = vector.load %arg5[%c0_6, %c0_7, %c0_8] : memref<1x16x128xbf16, #tpu.memory_space<vmem>>, vector<1x16x128xbf16>
    %12 = vector.shape_cast %11 : vector<1x16x128xbf16> to vector<16x128xbf16>
    %13 = vector.shape_cast %10 : vector<16x128xbf16> to vector<1x16x128xbf16>
    tpu.vector_store %arg5[%c0_6, %c0_7, %c0_8], %13 {strides = array<i32>} : memref<1x16x128xbf16, #tpu.memory_space<vmem>>, vector<1x16x128xbf16>,
    return
  }
  func.func @transform_0(%arg0: i32, %arg1: i32) -> (i32, i32, i32) {
    %c0_i32 = arith.constant 0 : i32
    %c0_i32_0 = arith.constant 0 : i32
    return %arg0, %arg1, %c0_i32 : i32, i32, i32
  }
  func.func @transform_1(%arg0: i32, %arg1: i32) -> (i32, i32) {
    %c0_i32 = arith.constant 0 : i32
    %c0_i32_0 = arith.constant 0 : i32
    %c0_i32_1 = arith.constant 0 : i32
    return %c0_i32, %c0_i32_0 : i32, i32
  }
  func.func @transform_2(%arg0: i32, %arg1: i32) -> (i32, i32) {
    %c0_i32 = arith.constant 0 : i32
    %c0_i32_0 = arith.constant 0 : i32
    %c0_i32_1 = arith.constant 0 : i32
    return %c0_i32, %c0_i32_0 : i32, i32
  }
  func.func @transform_3(%arg0: i32, %arg1: i32) -> (i32, i32, i32) {
    %c0_i32 = arith.constant 0 : i32
    %c0_i32_0 = arith.constant 0 : i32
    return %arg0, %arg1, %c0_i32 : i32, i32, i32
  }
}

module attributes {stable_mosaic.version = 11 : i64} {
  func.func @_matmul_stats_kernel(%arg0: i32, %arg1: i32, %arg2: memref<1x16x8xbf16, #tpu.memory_space<vmem>>, %arg3: memref<1x8x128xbf16, #tpu.memory_space<vmem>>, %arg4: memref<1x16x128xf32, #tpu.memory_space<vmem>>, %arg5: memref<1x8x128xf32, #tpu.memory_space<vmem>>) attributes {dimension_semantics = [#tpu.dimension_semantics<parallel>, #tpu.dimension_semantics<parallel>], iteration_bounds = array<i64: 16, 1>, scalar_prefetch = 0 : i64, scratch_operands = 0 : i64, tpu.core_type = #tpu.core_type<tc>, window_params = [{transform_indices = @transform_0, window_bounds = array<i64: 1, 16, 8>}, {transform_indices = @transform_1, window_bounds = array<i64: 1, 8, 128>}, {transform_indices = @transform_2, window_bounds = array<i64: 1, 16, 128>}, {transform_indices = @transform_3, window_bounds = array<i64: 1, 8, 128>}]} {
    %c0 = arith.constant 0 : index
    %c0_0 = arith.constant 0 : index
    %c0_1 = arith.constant 0 : index
    %0 = vector.load %arg2[%c0, %c0_0, %c0_1] : memref<1x16x8xbf16, #tpu.memory_space<vmem>>, vector<1x16x8xbf16>
    %1 = vector.shape_cast %0 : vector<1x16x8xbf16> to vector<16x8xbf16>
    %c0_2 = arith.constant 0 : index
    %c0_3 = arith.constant 0 : index
    %c0_4 = arith.constant 0 : index
    %2 = vector.load %arg3[%c0_2, %c0_3, %c0_4] : memref<1x8x128xbf16, #tpu.memory_space<vmem>>, vector<1x8x128xbf16>
    %3 = vector.shape_cast %2 : vector<1x8x128xbf16> to vector<8x128xbf16>
    %cst = arith.constant dense<0.000000e+00> : vector<16x128xf32>
    %4 = tpu.matmul %1, %3, %cst {dimension_numbers = #tpu.dot_dimension_numbers<[1], [0], [0], [1], [0, 0, 1, 1], [], []>} : vector<16x8xbf16>, vector<8x128xbf16>, vector<16x128xf32> -> vector<16x128xf32>
    %c0_5 = arith.constant 0 : index
    %c0_6 = arith.constant 0 : index
    %c0_7 = arith.constant 0 : index
    %5 = vector.load %arg4[%c0_5, %c0_6, %c0_7] : memref<1x16x128xf32, #tpu.memory_space<vmem>>, vector<1x16x128xf32>
    %6 = vector.shape_cast %5 : vector<1x16x128xf32> to vector<16x128xf32>
    %7 = vector.shape_cast %4 : vector<16x128xf32> to vector<1x16x128xf32>
    tpu.vector_store %arg4[%c0_5, %c0_6, %c0_7], %7 {strides = array<i32>} : memref<1x16x128xf32, #tpu.memory_space<vmem>>, vector<1x16x128xf32>,
    %cst_8 = arith.constant dense<0.000000e+00> : vector<128xf32>
    %8 = vector.multi_reduction <add>, %4, %cst_8 [0] : vector<16x128xf32> to vector<128xf32>
    %9 = vector.shape_cast %8 : vector<128xf32> to vector<1x128xf32>
    %10 = arith.mulf %4, %4 : vector<16x128xf32>
    %cst_9 = arith.constant dense<0.000000e+00> : vector<128xf32>
    %11 = vector.multi_reduction <add>, %10, %cst_9 [0] : vector<16x128xf32> to vector<128xf32>
    %12 = vector.shape_cast %11 : vector<128xf32> to vector<1x128xf32>
    %cst_10 = arith.constant 0.000000e+00 : f32
    %13 = vector.broadcast %cst_10 : f32 to vector<6x128xf32>
    %14 = tpu.concatenate %9, %12, %13 in 0 : vector<1x128xf32>, vector<1x128xf32>, vector<6x128xf32> -> vector<8x128xf32>
    %c0_11 = arith.constant 0 : index
    %c0_12 = arith.constant 0 : index
    %c0_13 = arith.constant 0 : index
    %15 = vector.load %arg5[%c0_11, %c0_12, %c0_13] : memref<1x8x128xf32, #tpu.memory_space<vmem>>, vector<1x8x128xf32>
    %16 = vector.shape_cast %15 : vector<1x8x128xf32> to vector<8x128xf32>
    %17 = vector.shape_cast %14 : vector<8x128xf32> to vector<1x8x128xf32>
    tpu.vector_store %arg5[%c0_11, %c0_12, %c0_13], %17 {strides = array<i32>} : memref<1x8x128xf32, #tpu.memory_space<vmem>>, vector<1x8x128xf32>,
    return
  }
  func.func @transform_0(%arg0: i32, %arg1: i32) -> (i32, i32, i32) {
    %c0_i32 = arith.constant 0 : i32
    %c0_i32_0 = arith.constant 0 : i32
    return %arg0, %arg1, %c0_i32 : i32, i32, i32
  }
  func.func @transform_1(%arg0: i32, %arg1: i32) -> (i32, i32, i32) {
    %c0_i32 = arith.constant 0 : i32
    %c0_i32_0 = arith.constant 0 : i32
    %c0_i32_1 = arith.constant 0 : i32
    return %arg0, %c0_i32, %c0_i32_0 : i32, i32, i32
  }
  func.func @transform_2(%arg0: i32, %arg1: i32) -> (i32, i32, i32) {
    %c0_i32 = arith.constant 0 : i32
    %c0_i32_0 = arith.constant 0 : i32
    return %arg0, %arg1, %c0_i32 : i32, i32, i32
  }
  func.func @transform_3(%arg0: i32, %arg1: i32) -> (i32, i32, i32) {
    %c1_i32 = arith.constant 1 : i32
    %0 = arith.muli %arg0, %c1_i32 : i32
    %1 = arith.addi %0, %arg1 : i32
    %c0_i32 = arith.constant 0 : i32
    %c0_i32_0 = arith.constant 0 : i32
    %c0_i32_1 = arith.constant 0 : i32
    return %1, %c0_i32, %c0_i32_0 : i32, i32, i32
  }
}

module attributes {stable_mosaic.version = 11 : i64} {
  func.func @_matmul_stats_kernel(%arg0: i32, %arg1: i32, %arg2: memref<1x32x64xbf16, #tpu.memory_space<vmem>>, %arg3: memref<1x64x128xbf16, #tpu.memory_space<vmem>>, %arg4: memref<1x32x128xf32, #tpu.memory_space<vmem>>, %arg5: memref<1x8x128xf32, #tpu.memory_space<vmem>>) attributes {dimension_semantics = [#tpu.dimension_semantics<parallel>, #tpu.dimension_semantics<parallel>], iteration_bounds = array<i64: 4, 1>, scalar_prefetch = 0 : i64, scratch_operands = 0 : i64, tpu.core_type = #tpu.core_type<tc>, window_params = [{transform_indices = @transform_0, window_bounds = array<i64: 1, 32, 64>}, {transform_indices = @transform_1, window_bounds = array<i64: 1, 64, 128>}, {transform_indices = @transform_2, window_bounds = array<i64: 1, 32, 128>}, {transform_indices = @transform_3, window_bounds = array<i64: 1, 8, 128>}]} {
    %c0 = arith.constant 0 : index
    %c0_0 = arith.constant 0 : index
    %c0_1 = arith.constant 0 : index
    %0 = vector.load %arg2[%c0, %c0_0, %c0_1] : memref<1x32x64xbf16, #tpu.memory_space<vmem>>, vector<1x32x64xbf16>
    %1 = vector.shape_cast %0 : vector<1x32x64xbf16> to vector<32x64xbf16>
    %c0_2 = arith.constant 0 : index
    %c0_3 = arith.constant 0 : index
    %c0_4 = arith.constant 0 : index
    %2 = vector.load %arg3[%c0_2, %c0_3, %c0_4] : memref<1x64x128xbf16, #tpu.memory_space<vmem>>, vector<1x64x128xbf16>
    %3 = vector.shape_cast %2 : vector<1x64x128xbf16> to vector<64x128xbf16>
    %cst = arith.constant dense<0.000000e+00> : vector<32x128xf32>
    %4 = tpu.matmul %1, %3, %cst {dimension_numbers = #tpu.dot_dimension_numbers<[1], [0], [0], [1], [0, 0, 1, 1], [], []>} : vector<32x64xbf16>, vector<64x128xbf16>, vector<32x128xf32> -> vector<32x128xf32>
    %c0_5 = arith.constant 0 : index
    %c0_6 = arith.constant 0 : index
    %c0_7 = arith.constant 0 : index
    %5 = vector.load %arg4[%c0_5, %c0_6, %c0_7] : memref<1x32x128xf32, #tpu.memory_space<vmem>>, vector<1x32x128xf32>
    %6 = vector.shape_cast %5 : vector<1x32x128xf32> to vector<32x128xf32>
    %7 = vector.shape_cast %4 : vector<32x128xf32> to vector<1x32x128xf32>
    tpu.vector_store %arg4[%c0_5, %c0_6, %c0_7], %7 {strides = array<i32>} : memref<1x32x128xf32, #tpu.memory_space<vmem>>, vector<1x32x128xf32>,
    %cst_8 = arith.constant dense<0.000000e+00> : vector<128xf32>
    %8 = vector.multi_reduction <add>, %4, %cst_8 [0] : vector<32x128xf32> to vector<128xf32>
    %9 = vector.shape_cast %8 : vector<128xf32> to vector<1x128xf32>
    %10 = arith.mulf %4, %4 : vector<32x128xf32>
    %cst_9 = arith.constant dense<0.000000e+00> : vector<128xf32>
    %11 = vector.multi_reduction <add>, %10, %cst_9 [0] : vector<32x128xf32> to vector<128xf32>
    %12 = vector.shape_cast %11 : vector<128xf32> to vector<1x128xf32>
    %cst_10 = arith.constant 0.000000e+00 : f32
    %13 = vector.broadcast %cst_10 : f32 to vector<6x128xf32>
    %14 = tpu.concatenate %9, %12, %13 in 0 : vector<1x128xf32>, vector<1x128xf32>, vector<6x128xf32> -> vector<8x128xf32>
    %c0_11 = arith.constant 0 : index
    %c0_12 = arith.constant 0 : index
    %c0_13 = arith.constant 0 : index
    %15 = vector.load %arg5[%c0_11, %c0_12, %c0_13] : memref<1x8x128xf32, #tpu.memory_space<vmem>>, vector<1x8x128xf32>
    %16 = vector.shape_cast %15 : vector<1x8x128xf32> to vector<8x128xf32>
    %17 = vector.shape_cast %14 : vector<8x128xf32> to vector<1x8x128xf32>
    tpu.vector_store %arg5[%c0_11, %c0_12, %c0_13], %17 {strides = array<i32>} : memref<1x8x128xf32, #tpu.memory_space<vmem>>, vector<1x8x128xf32>,
    return
  }
  func.func @transform_0(%arg0: i32, %arg1: i32) -> (i32, i32, i32) {
    %c0_i32 = arith.constant 0 : i32
    %c0_i32_0 = arith.constant 0 : i32
    return %arg0, %arg1, %c0_i32 : i32, i32, i32
  }
  func.func @transform_1(%arg0: i32, %arg1: i32) -> (i32, i32, i32) {
    %c0_i32 = arith.constant 0 : i32
    %c0_i32_0 = arith.constant 0 : i32
    %c0_i32_1 = arith.constant 0 : i32
    return %arg0, %c0_i32, %c0_i32_0 : i32, i32, i32
  }
  func.func @transform_2(%arg0: i32, %arg1: i32) -> (i32, i32, i32) {
    %c0_i32 = arith.constant 0 : i32
    %c0_i32_0 = arith.constant 0 : i32
    return %arg0, %arg1, %c0_i32 : i32, i32, i32
  }
  func.func @transform_3(%arg0: i32, %arg1: i32) -> (i32, i32, i32) {
    %c1_i32 = arith.constant 1 : i32
    %0 = arith.muli %arg0, %c1_i32 : i32
    %1 = arith.addi %0, %arg1 : i32
    %c0_i32 = arith.constant 0 : i32
    %c0_i32_0 = arith.constant 0 : i32
    %c0_i32_1 = arith.constant 0 : i32
    return %1, %c0_i32, %c0_i32_0 : i32, i32, i32
  }
}

module attributes {stable_mosaic.version = 11 : i64} {
  func.func @_bn_relu_kernel(%arg0: i32, %arg1: i32, %arg2: memref<1x32x128xf32, #tpu.memory_space<vmem>>, %arg3: memref<1x128xf32, #tpu.memory_space<vmem>>, %arg4: memref<1x128xf32, #tpu.memory_space<vmem>>, %arg5: memref<1x32x128xbf16, #tpu.memory_space<vmem>>) attributes {dimension_semantics = [#tpu.dimension_semantics<parallel>, #tpu.dimension_semantics<parallel>], iteration_bounds = array<i64: 4, 1>, scalar_prefetch = 0 : i64, scratch_operands = 0 : i64, tpu.core_type = #tpu.core_type<tc>, window_params = [{transform_indices = @transform_0, window_bounds = array<i64: 1, 32, 128>}, {pipeline_mode = #tpu.pipeline_mode<synchronous>, transform_indices = @transform_1, window_bounds = array<i64: 1, 128>}, {pipeline_mode = #tpu.pipeline_mode<synchronous>, transform_indices = @transform_2, window_bounds = array<i64: 1, 128>}, {transform_indices = @transform_3, window_bounds = array<i64: 1, 32, 128>}]} {
    %c0 = arith.constant 0 : index
    %c0_0 = arith.constant 0 : index
    %c0_1 = arith.constant 0 : index
    %0 = vector.load %arg2[%c0, %c0_0, %c0_1] : memref<1x32x128xf32, #tpu.memory_space<vmem>>, vector<1x32x128xf32>
    %1 = vector.shape_cast %0 : vector<1x32x128xf32> to vector<32x128xf32>
    %c0_2 = arith.constant 0 : index
    %c0_3 = arith.constant 0 : index
    %2 = vector.load %arg3[%c0_2, %c0_3] : memref<1x128xf32, #tpu.memory_space<vmem>>, vector<1x128xf32>
    %3 = vector.broadcast %2 : vector<1x128xf32> to vector<32x128xf32>
    %4 = arith.mulf %1, %3 : vector<32x128xf32>
    %c0_4 = arith.constant 0 : index
    %c0_5 = arith.constant 0 : index
    %5 = vector.load %arg4[%c0_4, %c0_5] : memref<1x128xf32, #tpu.memory_space<vmem>>, vector<1x128xf32>
    %6 = vector.broadcast %5 : vector<1x128xf32> to vector<32x128xf32>
    %7 = arith.addf %4, %6 : vector<32x128xf32>
    %cst = arith.constant 0.000000e+00 : f32
    %8 = vector.broadcast %cst : f32 to vector<32x128xf32>
    %9 = arith.maximumf %7, %8 : vector<32x128xf32>
    %10 = arith.truncf %9 : vector<32x128xf32> to vector<32x128xbf16>
    %c0_6 = arith.constant 0 : index
    %c0_7 = arith.constant 0 : index
    %c0_8 = arith.constant 0 : index
    %11 = vector.load %arg5[%c0_6, %c0_7, %c0_8] : memref<1x32x128xbf16, #tpu.memory_space<vmem>>, vector<1x32x128xbf16>
    %12 = vector.shape_cast %11 : vector<1x32x128xbf16> to vector<32x128xbf16>
    %13 = vector.shape_cast %10 : vector<32x128xbf16> to vector<1x32x128xbf16>
    tpu.vector_store %arg5[%c0_6, %c0_7, %c0_8], %13 {strides = array<i32>} : memref<1x32x128xbf16, #tpu.memory_space<vmem>>, vector<1x32x128xbf16>,
    return
  }
  func.func @transform_0(%arg0: i32, %arg1: i32) -> (i32, i32, i32) {
    %c0_i32 = arith.constant 0 : i32
    %c0_i32_0 = arith.constant 0 : i32
    return %arg0, %arg1, %c0_i32 : i32, i32, i32
  }
  func.func @transform_1(%arg0: i32, %arg1: i32) -> (i32, i32) {
    %c0_i32 = arith.constant 0 : i32
    %c0_i32_0 = arith.constant 0 : i32
    %c0_i32_1 = arith.constant 0 : i32
    return %c0_i32, %c0_i32_0 : i32, i32
  }
  func.func @transform_2(%arg0: i32, %arg1: i32) -> (i32, i32) {
    %c0_i32 = arith.constant 0 : i32
    %c0_i32_0 = arith.constant 0 : i32
    %c0_i32_1 = arith.constant 0 : i32
    return %c0_i32, %c0_i32_0 : i32, i32
  }
  func.func @transform_3(%arg0: i32, %arg1: i32) -> (i32, i32, i32) {
    %c0_i32 = arith.constant 0 : i32
    %c0_i32_0 = arith.constant 0 : i32
    return %arg0, %arg1, %c0_i32 : i32, i32, i32
  }
}

module attributes {stable_mosaic.version = 11 : i64} {
  func.func @_matmul_stats_kernel(%arg0: i32, %arg1: i32, %arg2: memref<1x128x72xbf16, #tpu.memory_space<vmem>>, %arg3: memref<1x72x128xbf16, #tpu.memory_space<vmem>>, %arg4: memref<1x128x128xf32, #tpu.memory_space<vmem>>, %arg5: memref<1x8x128xf32, #tpu.memory_space<vmem>>) attributes {dimension_semantics = [#tpu.dimension_semantics<parallel>, #tpu.dimension_semantics<parallel>], iteration_bounds = array<i64: 1, 1>, scalar_prefetch = 0 : i64, scratch_operands = 0 : i64, tpu.core_type = #tpu.core_type<tc>, window_params = [{transform_indices = @transform_0, window_bounds = array<i64: 1, 128, 72>}, {transform_indices = @transform_1, window_bounds = array<i64: 1, 72, 128>}, {transform_indices = @transform_2, window_bounds = array<i64: 1, 128, 128>}, {transform_indices = @transform_3, window_bounds = array<i64: 1, 8, 128>}]} {
    %c0 = arith.constant 0 : index
    %c0_0 = arith.constant 0 : index
    %c0_1 = arith.constant 0 : index
    %0 = vector.load %arg2[%c0, %c0_0, %c0_1] : memref<1x128x72xbf16, #tpu.memory_space<vmem>>, vector<1x128x72xbf16>
    %1 = vector.shape_cast %0 : vector<1x128x72xbf16> to vector<128x72xbf16>
    %c0_2 = arith.constant 0 : index
    %c0_3 = arith.constant 0 : index
    %c0_4 = arith.constant 0 : index
    %2 = vector.load %arg3[%c0_2, %c0_3, %c0_4] : memref<1x72x128xbf16, #tpu.memory_space<vmem>>, vector<1x72x128xbf16>
    %3 = vector.shape_cast %2 : vector<1x72x128xbf16> to vector<72x128xbf16>
    %cst = arith.constant dense<0.000000e+00> : vector<128x128xf32>
    %4 = tpu.matmul %1, %3, %cst {dimension_numbers = #tpu.dot_dimension_numbers<[1], [0], [0], [1], [0, 0, 1, 1], [], []>} : vector<128x72xbf16>, vector<72x128xbf16>, vector<128x128xf32> -> vector<128x128xf32>
    %c0_5 = arith.constant 0 : index
    %c0_6 = arith.constant 0 : index
    %c0_7 = arith.constant 0 : index
    %5 = vector.load %arg4[%c0_5, %c0_6, %c0_7] : memref<1x128x128xf32, #tpu.memory_space<vmem>>, vector<1x128x128xf32>
    %6 = vector.shape_cast %5 : vector<1x128x128xf32> to vector<128x128xf32>
    %7 = vector.shape_cast %4 : vector<128x128xf32> to vector<1x128x128xf32>
    tpu.vector_store %arg4[%c0_5, %c0_6, %c0_7], %7 {strides = array<i32>} : memref<1x128x128xf32, #tpu.memory_space<vmem>>, vector<1x128x128xf32>,
    %cst_8 = arith.constant dense<0.000000e+00> : vector<128xf32>
    %8 = vector.multi_reduction <add>, %4, %cst_8 [0] : vector<128x128xf32> to vector<128xf32>
    %9 = vector.shape_cast %8 : vector<128xf32> to vector<1x128xf32>
    %10 = arith.mulf %4, %4 : vector<128x128xf32>
    %cst_9 = arith.constant dense<0.000000e+00> : vector<128xf32>
    %11 = vector.multi_reduction <add>, %10, %cst_9 [0] : vector<128x128xf32> to vector<128xf32>
    %12 = vector.shape_cast %11 : vector<128xf32> to vector<1x128xf32>
    %cst_10 = arith.constant 0.000000e+00 : f32
    %13 = vector.broadcast %cst_10 : f32 to vector<6x128xf32>
    %14 = tpu.concatenate %9, %12, %13 in 0 : vector<1x128xf32>, vector<1x128xf32>, vector<6x128xf32> -> vector<8x128xf32>
    %c0_11 = arith.constant 0 : index
    %c0_12 = arith.constant 0 : index
    %c0_13 = arith.constant 0 : index
    %15 = vector.load %arg5[%c0_11, %c0_12, %c0_13] : memref<1x8x128xf32, #tpu.memory_space<vmem>>, vector<1x8x128xf32>
    %16 = vector.shape_cast %15 : vector<1x8x128xf32> to vector<8x128xf32>
    %17 = vector.shape_cast %14 : vector<8x128xf32> to vector<1x8x128xf32>
    tpu.vector_store %arg5[%c0_11, %c0_12, %c0_13], %17 {strides = array<i32>} : memref<1x8x128xf32, #tpu.memory_space<vmem>>, vector<1x8x128xf32>,
    return
  }
  func.func @transform_0(%arg0: i32, %arg1: i32) -> (i32, i32, i32) {
    %c0_i32 = arith.constant 0 : i32
    %c0_i32_0 = arith.constant 0 : i32
    return %arg0, %arg1, %c0_i32 : i32, i32, i32
  }
  func.func @transform_1(%arg0: i32, %arg1: i32) -> (i32, i32, i32) {
    %c0_i32 = arith.constant 0 : i32
    %c0_i32_0 = arith.constant 0 : i32
    %c0_i32_1 = arith.constant 0 : i32
    return %arg0, %c0_i32, %c0_i32_0 : i32, i32, i32
  }
  func.func @transform_2(%arg0: i32, %arg1: i32) -> (i32, i32, i32) {
    %c0_i32 = arith.constant 0 : i32
    %c0_i32_0 = arith.constant 0 : i32
    return %arg0, %arg1, %c0_i32 : i32, i32, i32
  }
  func.func @transform_3(%arg0: i32, %arg1: i32) -> (i32, i32, i32) {
    %c1_i32 = arith.constant 1 : i32
    %0 = arith.muli %arg0, %c1_i32 : i32
    %1 = arith.addi %0, %arg1 : i32
    %c0_i32 = arith.constant 0 : i32
    %c0_i32_0 = arith.constant 0 : i32
    %c0_i32_1 = arith.constant 0 : i32
    return %1, %c0_i32, %c0_i32_0 : i32, i32, i32
  }
}

module attributes {stable_mosaic.version = 11 : i64} {
  func.func @_bn_relu_kernel(%arg0: i32, %arg1: i32, %arg2: memref<1x128x128xf32, #tpu.memory_space<vmem>>, %arg3: memref<1x128xf32, #tpu.memory_space<vmem>>, %arg4: memref<1x128xf32, #tpu.memory_space<vmem>>, %arg5: memref<1x128x128xbf16, #tpu.memory_space<vmem>>) attributes {dimension_semantics = [#tpu.dimension_semantics<parallel>, #tpu.dimension_semantics<parallel>], iteration_bounds = array<i64: 1, 1>, scalar_prefetch = 0 : i64, scratch_operands = 0 : i64, tpu.core_type = #tpu.core_type<tc>, window_params = [{transform_indices = @transform_0, window_bounds = array<i64: 1, 128, 128>}, {pipeline_mode = #tpu.pipeline_mode<synchronous>, transform_indices = @transform_1, window_bounds = array<i64: 1, 128>}, {pipeline_mode = #tpu.pipeline_mode<synchronous>, transform_indices = @transform_2, window_bounds = array<i64: 1, 128>}, {transform_indices = @transform_3, window_bounds = array<i64: 1, 128, 128>}]} {
    %c0 = arith.constant 0 : index
    %c0_0 = arith.constant 0 : index
    %c0_1 = arith.constant 0 : index
    %0 = vector.load %arg2[%c0, %c0_0, %c0_1] : memref<1x128x128xf32, #tpu.memory_space<vmem>>, vector<1x128x128xf32>
    %1 = vector.shape_cast %0 : vector<1x128x128xf32> to vector<128x128xf32>
    %c0_2 = arith.constant 0 : index
    %c0_3 = arith.constant 0 : index
    %2 = vector.load %arg3[%c0_2, %c0_3] : memref<1x128xf32, #tpu.memory_space<vmem>>, vector<1x128xf32>
    %3 = vector.broadcast %2 : vector<1x128xf32> to vector<128x128xf32>
    %4 = arith.mulf %1, %3 : vector<128x128xf32>
    %c0_4 = arith.constant 0 : index
    %c0_5 = arith.constant 0 : index
    %5 = vector.load %arg4[%c0_4, %c0_5] : memref<1x128xf32, #tpu.memory_space<vmem>>, vector<1x128xf32>
    %6 = vector.broadcast %5 : vector<1x128xf32> to vector<128x128xf32>
    %7 = arith.addf %4, %6 : vector<128x128xf32>
    %cst = arith.constant 0.000000e+00 : f32
    %8 = vector.broadcast %cst : f32 to vector<128x128xf32>
    %9 = arith.maximumf %7, %8 : vector<128x128xf32>
    %10 = arith.truncf %9 : vector<128x128xf32> to vector<128x128xbf16>
    %c0_6 = arith.constant 0 : index
    %c0_7 = arith.constant 0 : index
    %c0_8 = arith.constant 0 : index
    %11 = vector.load %arg5[%c0_6, %c0_7, %c0_8] : memref<1x128x128xbf16, #tpu.memory_space<vmem>>, vector<1x128x128xbf16>
    %12 = vector.shape_cast %11 : vector<1x128x128xbf16> to vector<128x128xbf16>
    %13 = vector.shape_cast %10 : vector<128x128xbf16> to vector<1x128x128xbf16>
    tpu.vector_store %arg5[%c0_6, %c0_7, %c0_8], %13 {strides = array<i32>} : memref<1x128x128xbf16, #tpu.memory_space<vmem>>, vector<1x128x128xbf16>,
    return
  }
  func.func @transform_0(%arg0: i32, %arg1: i32) -> (i32, i32, i32) {
    %c0_i32 = arith.constant 0 : i32
    %c0_i32_0 = arith.constant 0 : i32
    return %arg0, %arg1, %c0_i32 : i32, i32, i32
  }
  func.func @transform_1(%arg0: i32, %arg1: i32) -> (i32, i32) {
    %c0_i32 = arith.constant 0 : i32
    %c0_i32_0 = arith.constant 0 : i32
    %c0_i32_1 = arith.constant 0 : i32
    return %c0_i32, %c0_i32_0 : i32, i32
  }
  func.func @transform_2(%arg0: i32, %arg1: i32) -> (i32, i32) {
    %c0_i32 = arith.constant 0 : i32
    %c0_i32_0 = arith.constant 0 : i32
    %c0_i32_1 = arith.constant 0 : i32
    return %c0_i32, %c0_i32_0 : i32, i32
  }
  func.func @transform_3(%arg0: i32, %arg1: i32) -> (i32, i32, i32) {
    %c0_i32 = arith.constant 0 : i32
    %c0_i32_0 = arith.constant 0 : i32
    return %arg0, %arg1, %c0_i32 : i32, i32, i32
  }
}

module attributes {stable_mosaic.version = 11 : i64} {
  func.func @_matmul_tanh_kernel(%arg0: i32, %arg1: i32, %arg2: memref<1x128x32xbf16, #tpu.memory_space<vmem>>, %arg3: memref<1x32x128xbf16, #tpu.memory_space<vmem>>, %arg4: memref<1x128x128xf32, #tpu.memory_space<vmem>>) attributes {dimension_semantics = [#tpu.dimension_semantics<parallel>, #tpu.dimension_semantics<parallel>], iteration_bounds = array<i64: 4, 1>, scalar_prefetch = 0 : i64, scratch_operands = 0 : i64, tpu.core_type = #tpu.core_type<tc>, window_params = [{transform_indices = @transform_0, window_bounds = array<i64: 1, 128, 32>}, {transform_indices = @transform_1, window_bounds = array<i64: 1, 32, 128>}, {transform_indices = @transform_2, window_bounds = array<i64: 1, 128, 128>}]} {
    %c0 = arith.constant 0 : index
    %c0_0 = arith.constant 0 : index
    %c0_1 = arith.constant 0 : index
    %0 = vector.load %arg2[%c0, %c0_0, %c0_1] : memref<1x128x32xbf16, #tpu.memory_space<vmem>>, vector<1x128x32xbf16>
    %1 = vector.shape_cast %0 : vector<1x128x32xbf16> to vector<128x32xbf16>
    %c0_2 = arith.constant 0 : index
    %c0_3 = arith.constant 0 : index
    %c0_4 = arith.constant 0 : index
    %2 = vector.load %arg3[%c0_2, %c0_3, %c0_4] : memref<1x32x128xbf16, #tpu.memory_space<vmem>>, vector<1x32x128xbf16>
    %3 = vector.shape_cast %2 : vector<1x32x128xbf16> to vector<32x128xbf16>
    %cst = arith.constant dense<0.000000e+00> : vector<128x128xf32>
    %4 = tpu.matmul %1, %3, %cst {dimension_numbers = #tpu.dot_dimension_numbers<[1], [0], [0], [1], [0, 0, 1, 1], [], []>} : vector<128x32xbf16>, vector<32x128xbf16>, vector<128x128xf32> -> vector<128x128xf32>
    %5 = math.tanh %4 : vector<128x128xf32>
    %c0_5 = arith.constant 0 : index
    %c0_6 = arith.constant 0 : index
    %c0_7 = arith.constant 0 : index
    %6 = vector.load %arg4[%c0_5, %c0_6, %c0_7] : memref<1x128x128xf32, #tpu.memory_space<vmem>>, vector<1x128x128xf32>
    %7 = vector.shape_cast %6 : vector<1x128x128xf32> to vector<128x128xf32>
    %8 = vector.shape_cast %5 : vector<128x128xf32> to vector<1x128x128xf32>
    tpu.vector_store %arg4[%c0_5, %c0_6, %c0_7], %8 {strides = array<i32>} : memref<1x128x128xf32, #tpu.memory_space<vmem>>, vector<1x128x128xf32>,
    return
  }
  func.func @transform_0(%arg0: i32, %arg1: i32) -> (i32, i32, i32) {
    %c0_i32 = arith.constant 0 : i32
    %c0_i32_0 = arith.constant 0 : i32
    return %arg0, %arg1, %c0_i32 : i32, i32, i32
  }
  func.func @transform_1(%arg0: i32, %arg1: i32) -> (i32, i32, i32) {
    %c0_i32 = arith.constant 0 : i32
    %c0_i32_0 = arith.constant 0 : i32
    %c0_i32_1 = arith.constant 0 : i32
    return %arg0, %c0_i32, %c0_i32_0 : i32, i32, i32
  }
  func.func @transform_2(%arg0: i32, %arg1: i32) -> (i32, i32, i32) {
    %c0_i32 = arith.constant 0 : i32
    %c0_i32_0 = arith.constant 0 : i32
    return %arg0, %arg1, %c0_i32 : i32, i32, i32
  }
}

</mosaic_0001>

<bundles_post_ra>
// kernel: _lambda_.7
= control target key start
LH: loop header
LB: loop body
LE: loop exit
PB: predicated region body
PF: predicated region fallthrough
CT: control target
= control target key end

     0   :  { %s555_s12 = smov 0   ;;  %s557_s13 = smov 0   ;;  %s603_s0 = inlined_call_operand.vmem [shape: bf16[16,16,8], index: 0, kind: input, shape index: {}]   ;;  %s604_s1 = inlined_call_operand.vmem [shape: bf16[16,8,128], index: 1, kind: input, shape index: {}]   ;;  %s605_s2 = inlined_call_operand.vmem [shape: f32[16,16,128], index: 2, kind: output, shape index: {0}]   ;;  %s606_s3 = inlined_call_operand.vmem [shape: f32[16,8,128], index: 3, kind: output, shape index: {1}]  }
   0x1   :  { %s559_s14 = smov 0  }
   0x2 LB: > { %s26_s15 = sadd.s32 1, %s527_s13  ;;  %p461_p0 = scmp.ge.s32.totalorder %s531_s14, 1  ;;  %s531_s14 = sphi %s559_s14, %s14_s14   ;;  %s527_s13 = sphi %s557_s13, %s608_s13   ;;  %s523_s12 = sphi %s555_s12, %s607_s12  }
   0x3   : > { %p28_p1 = scmp.ge.s32.totalorder %s26_s15, 16  ;;  %p172_p2 = scmp.lt.s32.totalorder %s531_s14, 17 }
   0x5   : > { %s610_s15 = smov (%p28_p1, %s26_s15), 0  ;;  %p173_p3 = pnand %p461_p0, %p172_p2 }
   0x6   : > { %p214_p4 = scmp.lt.s32.totalorder (!%p173_p3), %s523_s12, 15 }
   0x7   : > { %176 = sbr.rel (%p173_p3) target bundleno = 236 (0xec), region = 28 }
   0xc   : > { %v533_v0 = vmov 0.0   ;;  %vm534_vm0 = vmmov 0   ;;  %s612_s12 = smov (!%p214_p4, %s523_s12), 15  ;;  %vm256_vm1 = vcmask 1043456   ;;  %vm252_vm2 = vcmask 64512  }
   0xd   : > { %476 = vmatprep.subr.bf16.mxu0 %v533_v0  ;;  %478 = vmatprep.mubr.msk.bf16.mxu0 %vm534_vm0, %v533_v0  ;;  %s464_s16 = sshll.u32 %s612_s12, 2  ;;  %s472_s17 = sshll.u32 %s612_s12, 3  ;;  %vm319_vm3 = vcmask 1040384   ;;  %vm321_vm4 = vcmask 1041408  }
   0xe   : > { %s226_s20 = scalar_lea.vmem %s604_s1, %s464_s16  ;;  %s221_s23 = scalar_lea.vmem %s603_s0, %s472_s17 }
   0xf   : > { %v246_v1 = vld [vmem:[%s226_s20] sm:$0xf]  ;;  %s473_s24 = sshll.u32 %s612_s12, 4  ;;  %s241_s30 = scalar_lea.vmem %s606_s3, %s472_s17 }
  0x10   : > { %v258_v2 = vsel %vm256_vm1, %v246_v1, 0  ;;  %v508_v3 = vld [vmem:[%s221_s23] sm:$0xff]   ;;  %s235_s27 = scalar_lea.vmem %s605_s2, %s473_s24 }
  0x11   : > { %477 = vmatpush3.bf16.msra.mxu0 %v258_v2 }
  0x14   : > { %479 = vmatmul.mubr.msk.bf16.vlgmr.msra.gmra.mxu0 %vm252_vm2, %v508_v3 }
  0xd4   : > { %v294_v4 = vpop.f32.mrf.mxu0 }
  0xd5   : > { %301 = vst [vmem:[%s235_s27] sm:$0xff] %v294_v4  ;;  %v310_v7 = vmul.f32 %v294_v4, %v294_v4 }
  0xd6   : > { %v480_v5 = vpop.f32.mrf.mxu0 }
  0xd8   : > { %v297_v6 = vpop.f32.mrf.mxu0 }
  0xd9   : > { %302 = vst [vmem:[%s235_s27 + $0x8] sm:$0xff] %v297_v6  ;;  %v303_v8 = vadd.f32 %v297_v6, %v294_v4  ;;  %v311_v9 = vmul.f32 %v297_v6, %v297_v6 }
  0xda   : > { %v481_v10 = vpop.f32.mrf.mxu0 }
  0xdb   : > { %v304_v11 = vrot.slane %v303_v8, 4  ;;  %v312_v12 = vadd.f32 %v311_v9, %v310_v7 }
  0xdd   : > { %v305_v13 = vadd.f32 %v304_v11, %v303_v8  ;;  %v313_v14 = vrot.slane %v312_v12, 4 }
  0xdf   : > { %v306_v15 = vrot.slane %v305_v13, 2  ;;  %v314_v16 = vadd.f32 %v313_v14, %v312_v12 }
  0xe1   : > { %v307_v17 = vadd.f32 %v306_v15, %v305_v13  ;;  %v315_v18 = vrot.slane %v314_v16, 2 }
  0xe3   : > { %v308_v19 = vrot.slane %v307_v17, 1  ;;  %v316_v20 = vadd.f32 %v315_v18, %v314_v16 }
  0xe5   : > { %v317_v21 = vrot.slane %v316_v20, 1  ;;  %v309_v22 = vadd.f32 %v308_v19, %v307_v17 }
  0xe7   : > { %v318_v23 = vadd.f32 %v317_v21, %v316_v20 }
  0xe9   : > { %v320_v24 = vsel %vm319_vm3, %v309_v22, %v318_v23 }
  0xea   : > { %v322_v25 = vsel %vm321_vm4, %v320_v24, 0.0 }
  0xeb   : > { %323 = vst [vmem:[%s241_s30] sm:$0xff] %v322_v25 }
  0xec PF: > { %s14_s14 = sadd.s32 1, %s531_s14   ;;  %s607_s12 = smov %s527_s13 }
  0xed   : > { %p11_p5 = scmp.ge.s32.totalorder %s14_s14, 18   ;;  %s608_s13 = smov %s610_s15 }
  0xef   :  { %13 = sbr.rel (!%p11_p5) target bundleno = 2 (0x2), region = 73 }

// kernel: _lambda_.8
= control target key start
LH: loop header
LB: loop body
LE: loop exit
PB: predicated region body
PF: predicated region fallthrough
CT: control target
= control target key end

     0   :  { %s421_s12 = smov 0   ;;  %s423_s13 = smov 0   ;;  %s457_s0 = inlined_call_operand.vmem [shape: f32[16,16,128], index: 0, kind: input, shape index: {}]   ;;  %s458_s1 = inlined_call_operand.vmem [shape: f32[1,128], index: 1, kind: input, shape index: {}]   ;;  %s459_s2 = inlined_call_operand.vmem [shape: f32[1,128], index: 2, kind: input, shape index: {}]   ;;  %s460_s3 = inlined_call_operand.vmem [shape: bf16[16,16,128], index: 3, kind: output, shape index: {}]  }
   0x1   :  { %s425_s14 = smov 0  }
   0x2 LB: > { %s25_s15 = sadd.s32 1, %s395_s13  ;;  %p333_p0 = scmp.ge.s32.totalorder %s399_s14, 1  ;;  %s399_s14 = sphi %s425_s14, %s13_s14   ;;  %s395_s13 = sphi %s423_s13, %s462_s13   ;;  %s391_s12 = sphi %s421_s12, %s461_s12  }
   0x3   : > { %p27_p1 = scmp.ge.s32.totalorder %s25_s15, 16  ;;  %p158_p2 = scmp.lt.s32.totalorder %s399_s14, 17 }
   0x5   : > { %s464_s15 = smov (%p27_p1, %s25_s15), 0  ;;  %p159_p3 = pnand %p333_p0, %p158_p2 }
   0x6   : > { %p191_p4 = scmp.lt.s32.totalorder (!%p159_p3), %s391_s12, 15 }
   0x7   : > { %162 = sbr.rel (%p159_p3) target bundleno = 25 (0x19), region = 32 }
   0xc   : > { %s466_s12 = smov (!%p191_p4, %s391_s12), 15  ;;  %v338_v0 = vld [vmem:[%s458_s1] ss:$0 sm:$0xff] }
   0xd   : > { %s344_s16 = sshll.u32 %s466_s12, 4  ;;  %v339_v3 = vld [vmem:[%s459_s2] ss:$0 sm:$0xff]  ;;  %s345_s24 = sshll.u32 %s466_s12, 3 }
   0xe   : > { %s198_s21 = scalar_lea.vmem %s457_s0, %s344_s16  ;;  %s208_s27 = scalar_lea.vmem %s460_s3, %s345_s24 }
   0xf   : > { %v210_v1 = vld [vmem:[%s198_s21] sm:$0xff]  ;;  %v211_v2 = vld [vmem:[%s198_s21 + $0x8] sm:$0xff] }
  0x10   : > { %v219_v4 = vmul.f32 %v338_v0, %v210_v1  ;;  %v220_v5 = vmul.f32 %v338_v0, %v211_v2 }
  0x12   : > { %v228_v6 = vadd.f32 %v339_v3, %v219_v4  ;;  %v229_v7 = vadd.f32 %v339_v3, %v220_v5 }
  0x14   : > { %v230_v8 = vmax.f32 %v228_v6, 0.0  ;;  %v231_v9 = vmax.f32 %v229_v7, 0.0 }
  0x16   : > { %v351_v10 = vpack.c.bf16 %v231_v9, %v230_v8 }
  0x18   : > { %352 = vst [vmem:[%s208_s27] sm:$0xff] %v351_v10  }
  0x19 PF: > { %s13_s14 = sadd.s32 1, %s399_s14   ;;  %s461_s12 = smov %s395_s13 }
  0x1a   : > { %p10_p5 = scmp.ge.s32.totalorder %s13_s14, 18   ;;  %s462_s13 = smov %s464_s15 }
  0x1c   :  { %12 = sbr.rel (!%p10_p5) target bundleno = 2 (0x2), region = 62 }

// kernel: _lambda_.10
= control target key start
LH: loop header
LB: loop body
LE: loop exit
PB: predicated region body
PF: predicated region fallthrough
CT: control target
= control target key end

     0   :  { %s449_s12 = smov 0   ;;  %s451_s13 = smov 0   ;;  %s488_s0 = inlined_call_operand.vmem [shape: f32[4,32,128], index: 0, kind: input, shape index: {}]   ;;  %s489_s1 = inlined_call_operand.vmem [shape: f32[1,128], index: 1, kind: input, shape index: {}]   ;;  %s490_s2 = inlined_call_operand.vmem [shape: f32[1,128], index: 2, kind: input, shape index: {}]   ;;  %s491_s3 = inlined_call_operand.vmem [shape: bf16[4,32,128], index: 3, kind: output, shape index: {}]  }
   0x1   :  { %s453_s14 = smov 0  }
   0x2 LB: > { %s25_s15 = sadd.s32 1, %s423_s13  ;;  %p351_p0 = scmp.ge.s32.totalorder %s427_s14, 1  ;;  %s427_s14 = sphi %s453_s14, %s13_s14   ;;  %s423_s13 = sphi %s451_s13, %s493_s13   ;;  %s419_s12 = sphi %s449_s12, %s492_s12  }
   0x3   : > { %p27_p1 = scmp.ge.s32.totalorder %s25_s15, 4  ;;  %p158_p2 = scmp.lt.s32.totalorder %s427_s14, 5 }
   0x5   : > { %s495_s15 = smov (%p27_p1, %s25_s15), 0  ;;  %p159_p3 = pnand %p351_p0, %p158_p2 }
   0x6   : > { %p191_p4 = scmp.lt.s32.totalorder (!%p159_p3), %s419_s12, 3 }
   0x7   : > { %162 = sbr.rel (%p159_p3) target bundleno = 26 (0x1a), region = 32 }
   0xc   : > { %s497_s12 = smov (!%p191_p4, %s419_s12), 3  ;;  %v356_v0 = vld [vmem:[%s489_s1] ss:$0 sm:$0xff] }
   0xd   : > { %s364_s16 = sshll.u32 %s497_s12, 5  ;;  %v357_v1 = vld [vmem:[%s490_s2] ss:$0 sm:$0xff]  ;;  %s365_s24 = sshll.u32 %s497_s12, 4 }
   0xe   : > { %s198_s21 = scalar_lea.vmem %s488_s0, %s364_s16  ;;  %s208_s27 = scalar_lea.vmem %s491_s3, %s365_s24 }
   0xf   : > { %v210_v2 = vld [vmem:[%s198_s21] sm:$0xff]  ;;  %v211_v3 = vld [vmem:[%s198_s21 + $0x8] sm:$0xff]  ;;  %v212_v4 = vld [vmem:[%s198_s21 + $0x10] sm:$0xff] }
  0x10   : > { %v221_v5 = vmul.f32 %v356_v0, %v210_v2  ;;  %v222_v6 = vmul.f32 %v356_v0, %v211_v3  ;;  %v213_v7 = vld [vmem:[%s198_s21 + $0x18] sm:$0xff]  ;;  %v223_v8 = vmul.f32 %v356_v0, %v212_v4 }
  0x11   : > { %v224_v9 = vmul.f32 %v356_v0, %v213_v7 }
  0x12   : > { %v232_v10 = vadd.f32 %v357_v1, %v221_v5  ;;  %v233_v11 = vadd.f32 %v357_v1, %v222_v6  ;;  %v234_v12 = vadd.f32 %v357_v1, %v223_v8 }
  0x13   : > { %v235_v13 = vadd.f32 %v357_v1, %v224_v9 }
  0x14   : > { %v236_v14 = vmax.f32 %v232_v10, 0.0  ;;  %v237_v15 = vmax.f32 %v233_v11, 0.0  ;;  %v238_v16 = vmax.f32 %v234_v12, 0.0 }
  0x15   : > { %v239_v17 = vmax.f32 %v235_v13, 0.0 }
  0x16   : > { %v373_v18 = vpack.c.bf16 %v237_v15, %v236_v14 }
  0x17   : > { %v378_v19 = vpack.c.bf16 %v239_v17, %v238_v16 }
  0x18   : > { %374 = vst [vmem:[%s208_s27] sm:$0xff] %v373_v18  }
  0x19   : > { %380 = vst [vmem:[%s208_s27 + $0x8] sm:$0xff] %v378_v19  }
  0x1a PF: > { %s13_s14 = sadd.s32 1, %s427_s14   ;;  %s492_s12 = smov %s423_s13 }
  0x1b   : > { %p10_p5 = scmp.ge.s32.totalorder %s13_s14, 6   ;;  %s493_s13 = smov %s495_s15 }
  0x1d   :  { %12 = sbr.rel (!%p10_p5) target bundleno = 2 (0x2), region = 62 }

// kernel: _lambda_.9
= control target key start
LH: loop header
LB: loop body
LE: loop exit
PB: predicated region body
PF: predicated region fallthrough
CT: control target
= control target key end

     0   :  { %s630_s12 = smov 0   ;;  %s632_s13 = smov 0   ;;  %s674_s0 = inlined_call_operand.vmem [shape: bf16[4,32,64], index: 0, kind: input, shape index: {}]   ;;  %s675_s1 = inlined_call_operand.vmem [shape: bf16[4,64,128], index: 1, kind: input, shape index: {}]   ;;  %s676_s2 = inlined_call_operand.vmem [shape: f32[4,32,128], index: 2, kind: output, shape index: {0}]   ;;  %s677_s3 = inlined_call_operand.vmem [shape: f32[4,8,128], index: 3, kind: output, shape index: {1}]  }
   0x1   :  { %s634_s14 = smov 0  }
   0x2 LB: > { %s26_s15 = sadd.s32 1, %s604_s13  ;;  %p517_p0 = scmp.ge.s32.totalorder %s608_s14, 1  ;;  %s608_s14 = sphi %s634_s14, %s14_s14   ;;  %s604_s13 = sphi %s632_s13, %s679_s13   ;;  %s600_s12 = sphi %s630_s12, %s678_s12  }
   0x3   : > { %p28_p1 = scmp.ge.s32.totalorder %s26_s15, 4  ;;  %p173_p2 = scmp.lt.s32.totalorder %s608_s14, 5 }
   0x5   : > { %s681_s15 = smov (%p28_p1, %s26_s15), 0  ;;  %p174_p3 = pnand %p517_p0, %p173_p2 }
   0x6   : > { %p216_p4 = scmp.lt.s32.totalorder (!%p174_p3), %s600_s12, 3 }
   0x7   : > { %177 = sbr.rel (%p174_p3) target bundleno = 254 (0xfe), region = 28 }
   0xc   : > { %s683_s12 = smov (!%p216_p4, %s600_s12), 3  ;;  %vm293_vm0 = vcmask 523264   ;;  %vm375_vm1 = vcmask 1040384   ;;  %vm377_vm2 = vcmask 1041408  }
   0xd   : > { %s536_s16 = sshll.u32 %s683_s12, 5  ;;  %s535_s17 = sshll.u32 %s683_s12, 4 }
   0xe   : > { %s229_s20 = scalar_lea.vmem %s675_s1, %s536_s16  ;;  %s223_s23 = scalar_lea.vmem %s674_s0, %s535_s17 }
   0xf   : > { %v580_v0 = vld [vmem:[%s229_s20 + $0x18] sm:$0xff]   ;;  %v581_v1 = vld [vmem:[%s229_s20 + $0x10] sm:$0xff]   ;;  %v582_v2 = vld [vmem:[%s229_s20 + $0x8] sm:$0xff]   ;;  %s238_s26 = scalar_lea.vmem %s676_s2, %s536_s16  ;;  %s524_s27 = sshll.u32 %s683_s12, 3 }
  0x10   : > { %544 = vmatprep.subr.bf16.mxu0 %v580_v0  ;;  %v584_v3 = vld [vmem:[%s223_s23] sm:$0xff]   ;;  %v585_v5 = vld [vmem:[%s223_s23 + $0x8] sm:$0xff]   ;;  %s244_s30 = scalar_lea.vmem %s677_s3, %s524_s27 }
  0x11   : > { %545 = vmatpush3.bf16.msra.mxu0 %v580_v0  ;;  %552 = vmatprep.mubr.msk.bf16.mxu0 %vm293_vm0, %v584_v3  ;;  %v583_v4 = vld [vmem:[%s229_s20] sm:$0xff]  }
  0x12   : > { %546 = vmatprep.subr.bf16.mxu0 %v581_v1 }
  0x15   : > { %547 = vmatpush3.bf16.msra.mxu0 %v581_v1 }
  0x16   : > { %548 = vmatprep.subr.bf16.mxu0 %v582_v2 }
  0x19   : > { %549 = vmatpush3.bf16.msra.mxu0 %v582_v2 }
  0x1a   : > { %550 = vmatprep.subr.bf16.mxu0 %v583_v4 }
  0x1d   : > { %551 = vmatpush3.bf16.msra.mxu0 %v583_v4 }
  0x20   : > { %553 = vmatmul.mubr.msk.bf16.vlgmr.msra.gmra.mxu0 %vm293_vm0, %v585_v5 }
  0xe0   : > { %v554_v6 = vpop.f32.mrf.mxu0 }
  0xe1   : > { %351 = vst [vmem:[%s238_s26 + $0x10] sm:$0xff] %v554_v6  ;;  %v364_v13 = vmul.f32 %v554_v6, %v554_v6 }
  0xe2   : > { %v334_v7 = vpop.f32.mrf.mxu0 }
  0xe3   : > { %349 = vst [vmem:[%s238_s26] sm:$0xff] %v334_v7  ;;  %v362_v10 = vmul.f32 %v334_v7, %v334_v7 }
  0xe4   : > { %v555_v8 = vpop.f32.mrf.mxu0 }
  0xe5   : > { %352 = vst [vmem:[%s238_s26 + $0x18] sm:$0xff] %v555_v8  ;;  %v365_v16 = vmul.f32 %v555_v8, %v555_v8 }
  0xe6   : > { %v337_v9 = vpop.f32.mrf.mxu0 }
  0xe7   : > { %350 = vst [vmem:[%s238_s26 + $0x8] sm:$0xff] %v337_v9  ;;  %v353_v11 = vadd.f32 %v337_v9, %v334_v7  ;;  %v363_v12 = vmul.f32 %v337_v9, %v337_v9 }
  0xe9   : > { %v354_v14 = vadd.f32 %v554_v6, %v353_v11  ;;  %v366_v15 = vadd.f32 %v363_v12, %v362_v10 }
  0xeb   : > { %v355_v17 = vadd.f32 %v555_v8, %v354_v14  ;;  %v367_v18 = vadd.f32 %v366_v15, %v364_v13 }
  0xed   : > { %v356_v19 = vrot.slane %v355_v17, 4  ;;  %v368_v20 = vadd.f32 %v367_v18, %v365_v16 }
  0xef   : > { %v357_v21 = vadd.f32 %v356_v19, %v355_v17  ;;  %v369_v22 = vrot.slane %v368_v20, 4 }
  0xf1   : > { %v358_v23 = vrot.slane %v357_v21, 2  ;;  %v370_v24 = vadd.f32 %v369_v22, %v368_v20 }
  0xf3   : > { %v359_v25 = vadd.f32 %v358_v23, %v357_v21  ;;  %v371_v26 = vrot.slane %v370_v24, 2 }
  0xf5   : > { %v360_v27 = vrot.slane %v359_v25, 1  ;;  %v372_v28 = vadd.f32 %v371_v26, %v370_v24 }
  0xf7   : > { %v373_v29 = vrot.slane %v372_v28, 1  ;;  %v361_v30 = vadd.f32 %v360_v27, %v359_v25 }
  0xf9   : > { %v374_v31 = vadd.f32 %v373_v29, %v372_v28 }
  0xfb   : > { %v376_v32 = vsel %vm375_vm1, %v361_v30, %v374_v31 }
  0xfc   : > { %v378_v33 = vsel %vm377_vm2, %v376_v32, 0.0 }
  0xfd   : > { %379 = vst [vmem:[%s244_s30] sm:$0xff] %v378_v33 }
  0xfe PF: > { %s14_s14 = sadd.s32 1, %s608_s14   ;;  %s678_s12 = smov %s604_s13 }
  0xff   : > { %p11_p5 = scmp.ge.s32.totalorder %s14_s14, 6   ;;  %s679_s13 = smov %s681_s15 }
 0x101   :  { %13 = sbr.rel (!%p11_p5) target bundleno = 2 (0x2), region = 73 }

// kernel: _lambda_.11
= control target key start
LH: loop header
LB: loop body
LE: loop exit
PB: predicated region body
PF: predicated region fallthrough
CT: control target
= control target key end

     0   :  { %vm142_vm0 = vcmask 1043456   ;;  %vm117_vm1 = vcmask 588800   ;;  %vm317_vm2 = vcmask 1040384   ;;  %vm319_vm3 = vcmask 1041408   ;;  %s552_s1 = inlined_call_operand.vmem [shape: bf16[1,72,128], index: 1, kind: input, shape index: {}]   ;;  %s553_s0 = inlined_call_operand.vmem [shape: bf16[1,128,72], index: 0, kind: input, shape index: {}]   ;;  %s554_s2 = inlined_call_operand.vmem [shape: f32[1,128,128], index: 2, kind: output, shape index: {0}]   ;;  %s555_s3 = inlined_call_operand.vmem [shape: f32[1,8,128], index: 3, kind: output, shape index: {1}]  }
   0x1   :  { %v421_v0 = vld [vmem:[%s552_s1 + $0x20] ss:$0 sps:$4 sm:$0xff]   ;;  %v422_v1 = vld [vmem:[%s552_s1 + $0x18] sm:$0xff]   ;;  %v423_v3 = vld [vmem:[%s552_s1 + $0x10] sm:$0xff]  }
   0x2   :  { %419 = vmatprep.subr.msk.bf16.mxu0 %vm142_vm0, %v421_v0  ;;  %v144_v2 = vsel %vm142_vm0, %v421_v0, 0  ;;  %420 = vmatprep.subr.msk.bf16.mxu1 %vm142_vm0, %v421_v0  ;;  %v426_v4 = vld [vmem:[%s553_s0] sm:$0xff]   ;;  %v424_v5 = vld [vmem:[%s552_s1 + $0x8] sm:$0xff]   ;;  %v428_v10 = vld [vmem:[%s553_s0 + $0x10] sm:$0xff]  }
   0x3   :  { %384 = vmatpush3.bf16.msra.mxu0 %v144_v2  ;;  %414 = vmatpush3.bf16.msra.mxu1 %v144_v2  ;;  %v430_v6 = vld [vmem:[%s553_s0 + $0x20] sm:$0xff]   ;;  %v427_v8 = vld [vmem:[%s553_s0 + $0x8] sm:$0xff]   ;;  %v432_v11 = vld [vmem:[%s553_s0 + $0x30] sm:$0xff]  }
   0x4   :  { %385 = vmatprep.subr.bf16.mxu0 %v422_v1  ;;  %410 = vmatprep.subr.bf16.mxu1 %v422_v1  ;;  %v425_v7 = vld [vmem:[%s552_s1] sm:$0xff]   ;;  %v431_v9 = vld [vmem:[%s553_s0 + $0x28] sm:$0xff]   ;;  %v429_v12 = vld [vmem:[%s553_s0 + $0x18] sm:$0xff]  }
   0x5   :  { %393 = vmatprep.mubr.msk.bf16.mxu0 %vm117_vm1, %v426_v4  ;;  %401 = vmatprep.mubr.msk.bf16.mxu1 %vm117_vm1, %v430_v6  ;;  %v433_v13 = vld [vmem:[%s553_s0 + $0x38] sm:$0xff]  }
   0x7   :  { %386 = vmatpush3.bf16.msra.mxu0 %v422_v1  ;;  %415 = vmatpush3.bf16.msra.mxu1 %v422_v1 }
   0x8   :  { %387 = vmatprep.subr.bf16.mxu0 %v423_v3  ;;  %411 = vmatprep.subr.bf16.mxu1 %v423_v3 }
   0xb   :  { %388 = vmatpush3.bf16.msra.mxu0 %v423_v3  ;;  %416 = vmatpush3.bf16.msra.mxu1 %v423_v3 }
   0xc   :  { %389 = vmatprep.subr.bf16.mxu0 %v424_v5  ;;  %412 = vmatprep.subr.bf16.mxu1 %v424_v5 }
   0xf   :  { %390 = vmatpush3.bf16.msra.mxu0 %v424_v5  ;;  %417 = vmatpush3.bf16.msra.mxu1 %v424_v5 }
  0x10   :  { %391 = vmatprep.subr.bf16.mxu0 %v425_v7  ;;  %413 = vmatprep.subr.bf16.mxu1 %v425_v7 }
  0x13   :  { %392 = vmatpush3.bf16.msra.mxu0 %v425_v7  ;;  %418 = vmatpush3.bf16.msra.mxu1 %v425_v7 }
  0x16   :  { %394 = vmatmul.mubr.msk.bf16.vlgmr.msra.gmra.mxu0 %vm117_vm1, %v427_v8  ;;  %402 = vmatmul.mubr.msk.bf16.vlgmr.msra.gmra.mxu1 %vm117_vm1, %v431_v9 }
  0x17   :  { %397 = vmatprep.mubr.msk.bf16.mxu0 %vm117_vm1, %v428_v10  ;;  %405 = vmatprep.mubr.msk.bf16.mxu1 %vm117_vm1, %v432_v11 }
  0x1e   :  { %398 = vmatmul.mubr.msk.bf16.gmra.mxu0 %vm117_vm1, %v429_v12  ;;  %406 = vmatmul.mubr.msk.bf16.gmra.mxu1 %vm117_vm1, %v433_v13 }
  0xd6   :  { %v395_v14 = vpop.f32.mrf.mxu0  ;;  %v403_v15 = vpop.f32.mrf.mxu1 }
  0xd7   :  { %245 = vst [vmem:[%s554_s2 + $0x10] sm:$0xff] %v395_v14  ;;  %253 = vst [vmem:[%s554_s2 + $0x50] sm:$0xff] %v403_v15  ;;  %v282_v27 = vmul.f32 %v395_v14, %v395_v14  ;;  %v290_v57 = vmul.f32 %v403_v15, %v403_v15 }
  0xd8   :  { %v180_v16 = vpop.f32.mrf.mxu0  ;;  %v212_v17 = vpop.f32.mrf.mxu1 }
  0xd9   :  { %243 = vst [vmem:[%s554_s2] sm:$0xff] %v180_v16  ;;  %251 = vst [vmem:[%s554_s2 + $0x40] sm:$0xff] %v212_v17  ;;  %v280_v22 = vmul.f32 %v180_v16, %v180_v16  ;;  %v288_v51 = vmul.f32 %v212_v17, %v212_v17 }
  0xda   :  { %v396_v18 = vpop.f32.mrf.mxu0  ;;  %v404_v19 = vpop.f32.mrf.mxu1 }
  0xdb   :  { %246 = vst [vmem:[%s554_s2 + $0x18] sm:$0xff] %v396_v18  ;;  %254 = vst [vmem:[%s554_s2 + $0x58] sm:$0xff] %v404_v19  ;;  %v283_v32 = vmul.f32 %v396_v18, %v396_v18  ;;  %v291_v60 = vmul.f32 %v404_v19, %v404_v19 }
  0xdc   :  { %v183_v20 = vpop.f32.mrf.mxu0  ;;  %v215_v21 = vpop.f32.mrf.mxu1 }
  0xdd   :  { %244 = vst [vmem:[%s554_s2 + $0x8] sm:$0xff] %v183_v20  ;;  %v259_v23 = vadd.f32 %v183_v20, %v180_v16  ;;  %v281_v24 = vmul.f32 %v183_v20, %v183_v20  ;;  %252 = vst [vmem:[%s554_s2 + $0x48] sm:$0xff] %v215_v21  ;;  %v289_v55 = vmul.f32 %v215_v21, %v215_v21 }
  0xde   :  { %v399_v25 = vpop.f32.mrf.mxu0  ;;  %v407_v26 = vpop.f32.mrf.mxu1 }
  0xdf   :  { %v260_v28 = vadd.f32 %v395_v14, %v259_v23  ;;  %v296_v29 = vadd.f32 %v281_v24, %v280_v22  ;;  %249 = vst [vmem:[%s554_s2 + $0x30] sm:$0xff] %v399_v25  ;;  %257 = vst [vmem:[%s554_s2 + $0x70] sm:$0xff] %v407_v26  ;;  %v286_v45 = vmul.f32 %v399_v25, %v399_v25 }
  0xe0   :  { %v196_v30 = vpop.f32.mrf.mxu0  ;;  %v228_v31 = vpop.f32.mrf.mxu1  ;;  %v294_v5 = vmul.f32 %v407_v26, %v407_v26 }
  0xe1   :  { %v297_v33 = vadd.f32 %v296_v29, %v282_v27  ;;  %247 = vst [vmem:[%s554_s2 + $0x20] sm:$0xff] %v196_v30  ;;  %v261_v34 = vadd.f32 %v396_v18, %v260_v28  ;;  %255 = vst [vmem:[%s554_s2 + $0x60] sm:$0xff] %v228_v31  ;;  %v284_v38 = vmul.f32 %v196_v30, %v196_v30 }
  0xe2   :  { %v400_v35 = vpop.f32.mrf.mxu0  ;;  %v408_v36 = vpop.f32.mrf.mxu1  ;;  %v292_v0 = vmul.f32 %v228_v31, %v228_v31 }
  0xe3   :  { %v262_v37 = vadd.f32 %v261_v34, %v196_v30  ;;  %v298_v39 = vadd.f32 %v297_v33, %v283_v32  ;;  %250 = vst [vmem:[%s554_s2 + $0x38] sm:$0xff] %v400_v35  ;;  %258 = vst [vmem:[%s554_s2 + $0x78] sm:$0xff] %v408_v36  ;;  %v287_v48 = vmul.f32 %v400_v35, %v400_v35 }
  0xe4   :  { %v199_v40 = vpop.f32.mrf.mxu0  ;;  %v231_v41 = vpop.f32.mrf.mxu1  ;;  %v295_v8 = vmul.f32 %v408_v36, %v408_v36 }
  0xe5   :  { %v299_v42 = vadd.f32 %v298_v39, %v284_v38  ;;  %248 = vst [vmem:[%s554_s2 + $0x28] sm:$0xff] %v199_v40  ;;  %v263_v43 = vadd.f32 %v262_v37, %v199_v40  ;;  %v285_v44 = vmul.f32 %v199_v40, %v199_v40  ;;  %256 = vst [vmem:[%s554_s2 + $0x68] sm:$0xff] %v231_v41 }
  0xe6   :  { %v293_v4 = vmul.f32 %v231_v41, %v231_v41 }
  0xe7   :  { %v264_v46 = vadd.f32 %v399_v25, %v263_v43  ;;  %v300_v47 = vadd.f32 %v299_v42, %v285_v44 }
  0xe9   :  { %v265_v49 = vadd.f32 %v400_v35, %v264_v46  ;;  %v301_v50 = vadd.f32 %v300_v47, %v286_v45 }
  0xeb   :  { %v302_v52 = vadd.f32 %v301_v50, %v287_v48  ;;  %v266_v53 = vadd.f32 %v265_v49, %v212_v17 }
  0xed   :  { %v267_v54 = vadd.f32 %v266_v53, %v215_v21  ;;  %v303_v56 = vadd.f32 %v302_v52, %v288_v51 }
  0xef   :  { %v268_v58 = vadd.f32 %v403_v15, %v267_v54  ;;  %v304_v59 = vadd.f32 %v303_v56, %v289_v55 }
  0xf1   :  { %v305_v61 = vadd.f32 %v304_v59, %v290_v57  ;;  %v269_v62 = vadd.f32 %v404_v19, %v268_v58 }
  0xf3   :  { %v270_v63 = vadd.f32 %v269_v62, %v228_v31  ;;  %v306_v1 = vadd.f32 %v305_v61, %v291_v60 }
  0xf5   :  { %v307_v2 = vadd.f32 %v306_v1, %v292_v0  ;;  %v271_v3 = vadd.f32 %v270_v63, %v231_v41 }
  0xf7   :  { %v272_v6 = vadd.f32 %v407_v26, %v271_v3  ;;  %v308_v7 = vadd.f32 %v307_v2, %v293_v4 }
  0xf9   :  { %v273_v9 = vadd.f32 %v408_v36, %v272_v6  ;;  %v309_v10 = vadd.f32 %v308_v7, %v294_v5 }
  0xfb   :  { %v274_v11 = vrot.slane %v273_v9, 4  ;;  %v310_v12 = vadd.f32 %v309_v10, %v295_v8 }
  0xfd   :  { %v275_v13 = vadd.f32 %v274_v11, %v273_v9  ;;  %v311_v14 = vrot.slane %v310_v12, 4 }
  0xff   :  { %v276_v15 = vrot.slane %v275_v13, 2  ;;  %v312_v16 = vadd.f32 %v311_v14, %v310_v12 }
 0x101   :  { %v277_v17 = vadd.f32 %v276_v15, %v275_v13  ;;  %v313_v18 = vrot.slane %v312_v16, 2 }
 0x103   :  { %v278_v19 = vrot.slane %v277_v17, 1  ;;  %v314_v20 = vadd.f32 %v313_v18, %v312_v16 }
 0x105   :  { %v315_v21 = vrot.slane %v314_v20, 1  ;;  %v279_v22 = vadd.f32 %v278_v19, %v277_v17 }
 0x107   :  { %v316_v23 = vadd.f32 %v315_v21, %v314_v20 }
 0x109   :  { %v318_v24 = vsel %vm317_vm2, %v279_v22, %v316_v23 }
 0x10a   :  { %v320_v25 = vsel %vm319_vm3, %v318_v24, 0.0 }
 0x10b   :  { %321 = vst [vmem:[%s555_s3] sm:$0xff] %v320_v25 }

// kernel: _lambda_.12
= control target key start
LH: loop header
LB: loop body
LE: loop exit
PB: predicated region body
PF: predicated region fallthrough
CT: control target
= control target key end

     0   :  { %s391_s0 = inlined_call_operand.vmem [shape: f32[1,128,128], index: 0, kind: input, shape index: {}]   ;;  %s392_s1 = inlined_call_operand.vmem [shape: f32[1,128], index: 1, kind: input, shape index: {}]   ;;  %s393_s2 = inlined_call_operand.vmem [shape: f32[1,128], index: 2, kind: input, shape index: {}]   ;;  %s394_s3 = inlined_call_operand.vmem [shape: bf16[1,128,128], index: 3, kind: output, shape index: {}]  }
   0x1   :  { %v14_v0 = vld [vmem:[%s391_s0] sm:$0xff]  ;;  %v15_v1 = vld [vmem:[%s391_s0 + $0x8] sm:$0xff]  ;;  %v16_v6 = vld [vmem:[%s391_s0 + $0x10] sm:$0xff] }
   0x2   :  { %v286_v2 = vld [vmem:[%s392_s1] ss:$0 sm:$0xff]  ;;  %v17_v7 = vld [vmem:[%s391_s0 + $0x18] sm:$0xff]  ;;  %v19_v11 = vld [vmem:[%s391_s0 + $0x28] sm:$0xff] }
   0x3   :  { %v37_v3 = vmul.f32 %v286_v2, %v14_v0  ;;  %v38_v4 = vmul.f32 %v286_v2, %v15_v1  ;;  %v293_v5 = vld [vmem:[%s393_s2] ss:$0 sm:$0xff]  ;;  %v39_v8 = vmul.f32 %v286_v2, %v16_v6  ;;  %v40_v9 = vmul.f32 %v286_v2, %v17_v7  ;;  %v20_v12 = vld [vmem:[%s391_s0 + $0x30] sm:$0xff]  ;;  %v21_v17 = vld [vmem:[%s391_s0 + $0x38] sm:$0xff] }
   0x4   :  { %v18_v10 = vld [vmem:[%s391_s0 + $0x20] sm:$0xff]  ;;  %v42_v16 = vmul.f32 %v286_v2, %v19_v11  ;;  %v43_v20 = vmul.f32 %v286_v2, %v20_v12  ;;  %v44_v21 = vmul.f32 %v286_v2, %v21_v17  ;;  %v23_v27 = vld [vmem:[%s391_s0 + $0x48] sm:$0xff]  ;;  %v24_v32 = vld [vmem:[%s391_s0 + $0x50] sm:$0xff] }
   0x5   :  { %v60_v13 = vadd.f32 %v293_v5, %v37_v3  ;;  %v61_v14 = vadd.f32 %v293_v5, %v38_v4  ;;  %v41_v15 = vmul.f32 %v286_v2, %v18_v10  ;;  %v62_v18 = vadd.f32 %v293_v5, %v39_v8  ;;  %v22_v22 = vld [vmem:[%s391_s0 + $0x40] sm:$0xff]  ;;  %v25_v33 = vld [vmem:[%s391_s0 + $0x58] sm:$0xff]  ;;  %v27_v39 = vld [vmem:[%s391_s0 + $0x68] sm:$0xff] }
   0x6   :  { %v63_v19 = vadd.f32 %v293_v5, %v40_v9  ;;  %v65_v26 = vadd.f32 %v293_v5, %v42_v16  ;;  %v66_v30 = vadd.f32 %v293_v5, %v43_v20  ;;  %v67_v31 = vadd.f32 %v293_v5, %v44_v21  ;;  %v26_v38 = vld [vmem:[%s391_s0 + $0x60] sm:$0xff]  ;;  %v28_v44 = vld [vmem:[%s391_s0 + $0x70] sm:$0xff]  ;;  %v29_v49 = vld [vmem:[%s391_s0 + $0x78] sm:$0xff] }
   0x7   :  { %v76_v23 = vmax.f32 %v60_v13, 0.0  ;;  %v77_v24 = vmax.f32 %v61_v14, 0.0  ;;  %v64_v25 = vadd.f32 %v293_v5, %v41_v15  ;;  %v78_v28 = vmax.f32 %v62_v18, 0.0 }
   0x8   :  { %v79_v29 = vmax.f32 %v63_v19, 0.0  ;;  %v81_v36 = vmax.f32 %v65_v26, 0.0  ;;  %v45_v37 = vmul.f32 %v286_v2, %v22_v22  ;;  %v82_v41 = vmax.f32 %v66_v30, 0.0 }
   0x9   :  { %v213_v34 = vpack.c.bf16 %v77_v24, %v76_v23  ;;  %v80_v35 = vmax.f32 %v64_v25, 0.0  ;;  %v83_v42 = vmax.f32 %v67_v31, 0.0  ;;  %v46_v43 = vmul.f32 %v286_v2, %v23_v27 }
   0xa   :  { %v218_v40 = vpack.c.bf16 %v79_v29, %v78_v28  ;;  %v68_v46 = vadd.f32 %v293_v5, %v45_v37  ;;  %v47_v47 = vmul.f32 %v286_v2, %v24_v32  ;;  %v48_v48 = vmul.f32 %v286_v2, %v25_v33 }
   0xb   :  { %214 = vst [vmem:[%s394_s3] sm:$0xff] %v213_v34   ;;  %v223_v45 = vpack.c.bf16 %v81_v36, %v80_v35  ;;  %v228_v50 = vpack.c.bf16 %v83_v42, %v82_v41  ;;  %v69_v51 = vadd.f32 %v293_v5, %v46_v43  ;;  %v49_v52 = vmul.f32 %v286_v2, %v26_v38 }
   0xc   :  { %250 = vst [vmem:[%s394_s3 + $0x8] sm:$0xff] %v218_v40   ;;  %v50_v53 = vmul.f32 %v286_v2, %v27_v39  ;;  %v84_v54 = vmax.f32 %v68_v46, 0.0  ;;  %v70_v55 = vadd.f32 %v293_v5, %v47_v47  ;;  %v71_v56 = vadd.f32 %v293_v5, %v48_v48 }
   0xd   :  { %251 = vst [vmem:[%s394_s3 + $0x10] sm:$0xff] %v223_v45   ;;  %v51_v57 = vmul.f32 %v286_v2, %v28_v44  ;;  %252 = vst [vmem:[%s394_s3 + $0x18] sm:$0xff] %v228_v50   ;;  %v85_v58 = vmax.f32 %v69_v51, 0.0  ;;  %v72_v59 = vadd.f32 %v293_v5, %v49_v52  ;;  %v52_v61 = vmul.f32 %v286_v2, %v29_v49 }
   0xe   :  { %v73_v60 = vadd.f32 %v293_v5, %v50_v53  ;;  %v86_v62 = vmax.f32 %v70_v55, 0.0  ;;  %v87_v63 = vmax.f32 %v71_v56, 0.0 }
   0xf   :  { %v74_v0 = vadd.f32 %v293_v5, %v51_v57  ;;  %v233_v1 = vpack.c.bf16 %v85_v58, %v84_v54  ;;  %v88_v3 = vmax.f32 %v72_v59, 0.0  ;;  %v75_v6 = vadd.f32 %v293_v5, %v52_v61 }
  0x10   :  { %v89_v4 = vmax.f32 %v73_v60, 0.0  ;;  %v238_v7 = vpack.c.bf16 %v87_v63, %v86_v62 }
  0x11   :  { %v90_v8 = vmax.f32 %v74_v0, 0.0  ;;  %253 = vst [vmem:[%s394_s3 + $0x20] sm:$0xff] %v233_v1   ;;  %v91_v10 = vmax.f32 %v75_v6, 0.0 }
  0x12   :  { %v243_v9 = vpack.c.bf16 %v89_v4, %v88_v3  ;;  %254 = vst [vmem:[%s394_s3 + $0x28] sm:$0xff] %v238_v7  }
  0x13   :  { %v248_v2 = vpack.c.bf16 %v91_v10, %v90_v8 }
  0x14   :  { %255 = vst [vmem:[%s394_s3 + $0x30] sm:$0xff] %v243_v9  }
  0x15   :  { %256 = vst [vmem:[%s394_s3 + $0x38] sm:$0xff] %v248_v2  }

// kernel: _lambda_.13
= control target key start
LH: loop header
LB: loop body
LE: loop exit
PB: predicated region body
PF: predicated region fallthrough
CT: control target
= control target key end

     0   :  { %s702_s9 = smov 0   ;;  %s704_s10 = smov 0   ;;  %s769_s0 = inlined_call_operand.vmem [shape: bf16[4,128,32], index: 0, kind: input, shape index: {}]   ;;  %s770_s1 = inlined_call_operand.vmem [shape: bf16[4,32,128], index: 1, kind: input, shape index: {}]   ;;  %s771_s2 = inlined_call_operand.vmem [shape: f32[4,128,128], index: 2, kind: output, shape index: {}]  }
   0x1   :  { %s706_s11 = smov 0  }
   0x2 LB: > { %s24_s12 = sadd.s32 1, %s681_s10  ;;  %p533_p0 = scmp.ge.s32.totalorder %s685_s11, 1  ;;  %s685_s11 = sphi %s706_s11, %s12_s11   ;;  %s681_s10 = sphi %s704_s10, %s773_s10   ;;  %s677_s9 = sphi %s702_s9, %s772_s9  }
   0x3   : > { %p26_p1 = scmp.ge.s32.totalorder %s24_s12, 4  ;;  %p143_p2 = scmp.lt.s32.totalorder %s685_s11, 5 }
   0x5   : > { %s775_s12 = smov (%p26_p1, %s24_s12), 0  ;;  %p144_p3 = pnand %p533_p0, %p143_p2 }
   0x6   : > { %p179_p4 = scmp.lt.s32.totalorder (!%p144_p3), %s677_s9, 3 }
   0x7   : > { %147 = sbr.rel (%p144_p3) target bundleno = 247 (0xf7), region = 28 }
   0xc   : > { %s777_s9 = smov (!%p179_p4, %s677_s9), 3  ;;  %vm276_vm0 = vcmask 261120  }
   0xd   : > { %s560_s13 = sshll.u32 %s777_s9, 6  ;;  %s561_s14 = sshll.u32 %s777_s9, 4 }
   0xe   : > { %s186_s17 = scalar_lea.vmem %s769_s0, %s560_s13  ;;  %s192_s20 = scalar_lea.vmem %s770_s1, %s561_s14 }
   0xf   : > { %v621_v0 = vld [vmem:[%s192_s20 + $0x8] sm:$0xff]   ;;  %v622_v1 = vld [vmem:[%s192_s20] sm:$0xff]   ;;  %v627_v6 = vld [vmem:[%s186_s17 + $0x10] sm:$0xff]   ;;  %s562_s21 = sshll.u32 %s777_s9, 7 }
  0x10   : > { %573 = vmatprep.subr.bf16.mxu0 %v621_v0  ;;  %593 = vmatprep.subr.bf16.mxu1 %v621_v0  ;;  %v623_v2 = vld [vmem:[%s186_s17] sm:$0xff]   ;;  %v625_v4 = vld [vmem:[%s186_s17 + $0x8] sm:$0xff]   ;;  %v628_v7 = vld [vmem:[%s186_s17 + $0x30] sm:$0xff]   ;;  %s742_s24 = scalar_lea.vmem %s771_s2, %s562_s21 }
  0x11   : > { %574 = vmatpush3.bf16.msra.mxu0 %v621_v0  ;;  %595 = vmatpush3.bf16.msra.mxu1 %v621_v0  ;;  %v624_v3 = vld [vmem:[%s186_s17 + $0x20] sm:$0xff]   ;;  %v626_v5 = vld [vmem:[%s186_s17 + $0x28] sm:$0xff]   ;;  %v629_v8 = vld [vmem:[%s186_s17 + $0x18] sm:$0xff]  }
  0x12   : > { %575 = vmatprep.subr.bf16.mxu0 %v622_v1  ;;  %594 = vmatprep.subr.bf16.mxu1 %v622_v1  ;;  %v630_v9 = vld [vmem:[%s186_s17 + $0x38] sm:$0xff]  }
  0x13   : > { %577 = vmatprep.mubr.msk.bf16.mxu0 %vm276_vm0, %v623_v2  ;;  %585 = vmatprep.mubr.msk.bf16.mxu1 %vm276_vm0, %v624_v3 }
  0x15   : > { %576 = vmatpush3.bf16.msra.mxu0 %v622_v1  ;;  %596 = vmatpush3.bf16.msra.mxu1 %v622_v1 }
  0x18   : > { %578 = vmatmul.mubr.msk.bf16.vlgmr.msra.gmra.mxu0 %vm276_vm0, %v625_v4  ;;  %586 = vmatmul.mubr.msk.bf16.vlgmr.msra.gmra.mxu1 %vm276_vm0, %v626_v5 }
  0x19   : > { %581 = vmatprep.mubr.msk.bf16.mxu0 %vm276_vm0, %v627_v6  ;;  %589 = vmatprep.mubr.msk.bf16.mxu1 %vm276_vm0, %v628_v7 }
  0x20   : > { %582 = vmatmul.mubr.msk.bf16.gmra.mxu0 %vm276_vm0, %v629_v8  ;;  %590 = vmatmul.mubr.msk.bf16.gmra.mxu1 %vm276_vm0, %v630_v9 }
  0xd8   : > { %v579_v10 = vpop.f32.mrf.mxu0  ;;  %v587_v11 = vpop.f32.mrf.mxu1 }
  0xd9   : > { %631 = vtanh.f32 %v579_v10 }
  0xda   : > { %633 = vtanh.f32 %v587_v11  ;;  %v335_v12 = vpop.f32.mrf.mxu0  ;;  %v367_v13 = vpop.f32.mrf.mxu1 }
  0xdb   : > { %635 = vtanh.f32 %v335_v12 }
  0xdc   : > { %637 = vtanh.f32 %v367_v13  ;;  %v580_v14 = vpop.f32.mrf.mxu0  ;;  %v588_v15 = vpop.f32.mrf.mxu1 }
  0xdd   : > { %639 = vtanh.f32 %v580_v14 }
  0xde   : > { %641 = vtanh.f32 %v588_v15  ;;  %v338_v16 = vpop.f32.mrf.mxu0  ;;  %v370_v17 = vpop.f32.mrf.mxu1 }
  0xdf   : > { %643 = vtanh.f32 %v338_v16 }
  0xe0   : > { %645 = vtanh.f32 %v370_v17  ;;  %v583_v18 = vpop.f32.mrf.mxu0  ;;  %v591_v19 = vpop.f32.mrf.mxu1 }
  0xe1   : > { %647 = vtanh.f32 %v583_v18 }
  0xe2   : > { %649 = vtanh.f32 %v591_v19  ;;  %v351_v20 = vpop.f32.mrf.mxu0  ;;  %v383_v21 = vpop.f32.mrf.mxu1 }
  0xe3   : > { %651 = vtanh.f32 %v351_v20 }
  0xe4   : > { %653 = vtanh.f32 %v383_v21  ;;  %v584_v22 = vpop.f32.mrf.mxu0  ;;  %v592_v23 = vpop.f32.mrf.mxu1 }
  0xe5   : > { %655 = vtanh.f32 %v584_v22 }
  0xe6   : > { %v632_v24 = vpop.eup %631  ;;  %657 = vtanh.f32 %v592_v23  ;;  %v354_v25 = vpop.f32.mrf.mxu0 }
  0xe7   : > { %v386_v26 = vpop.f32.mrf.mxu1  ;;  %v634_v27 = vpop.eup %633  ;;  %416 = vst [vmem:[%s742_s24 + $0x10] sm:$0xff] %v632_v24  ;;  %659 = vtanh.f32 %v354_v25 }
  0xe8   : > { %v636_v28 = vpop.eup %635  ;;  %424 = vst [vmem:[%s742_s24 + $0x50] sm:$0xff] %v634_v27  ;;  %661 = vtanh.f32 %v386_v26 }
  0xe9   : > { %v638_v29 = vpop.eup %637  ;;  %414 = vst [vmem:[%s742_s24] sm:$0xff] %v636_v28 }
  0xea   : > { %v640_v30 = vpop.eup %639  ;;  %422 = vst [vmem:[%s742_s24 + $0x40] sm:$0xff] %v638_v29 }
  0xeb   : > { %v642_v31 = vpop.eup %641  ;;  %417 = vst [vmem:[%s742_s24 + $0x18] sm:$0xff] %v640_v30 }
  0xec   : > { %v644_v32 = vpop.eup %643  ;;  %425 = vst [vmem:[%s742_s24 + $0x58] sm:$0xff] %v642_v31 }
  0xed   : > { %v646_v33 = vpop.eup %645  ;;  %415 = vst [vmem:[%s742_s24 + $0x8] sm:$0xff] %v644_v32 }
  0xee   : > { %v648_v34 = vpop.eup %647  ;;  %423 = vst [vmem:[%s742_s24 + $0x48] sm:$0xff] %v646_v33 }
  0xef   : > { %v650_v35 = vpop.eup %649  ;;  %420 = vst [vmem:[%s742_s24 + $0x30] sm:$0xff] %v648_v34 }
  0xf0   : > { %v652_v36 = vpop.eup %651  ;;  %428 = vst [vmem:[%s742_s24 + $0x70] sm:$0xff] %v650_v35 }
  0xf1   : > { %v654_v37 = vpop.eup %653  ;;  %418 = vst [vmem:[%s742_s24 + $0x20] sm:$0xff] %v652_v36 }
  0xf2   : > { %v656_v38 = vpop.eup %655  ;;  %426 = vst [vmem:[%s742_s24 + $0x60] sm:$0xff] %v654_v37 }
  0xf3   : > { %v658_v39 = vpop.eup %657  ;;  %421 = vst [vmem:[%s742_s24 + $0x38] sm:$0xff] %v656_v38 }
  0xf4   : > { %v660_v40 = vpop.eup %659  ;;  %429 = vst [vmem:[%s742_s24 + $0x78] sm:$0xff] %v658_v39 }
  0xf5   : > { %v662_v41 = vpop.eup %661  ;;  %419 = vst [vmem:[%s742_s24 + $0x28] sm:$0xff] %v660_v40 }
  0xf6   : > { %427 = vst [vmem:[%s742_s24 + $0x68] sm:$0xff] %v662_v41 }
  0xf7 PF: > { %s12_s11 = sadd.s32 1, %s685_s11   ;;  %s772_s9 = smov %s681_s10 }
  0xf8   : > { %p9_p5 = scmp.ge.s32.totalorder %s12_s11, 6   ;;  %s773_s10 = smov %s775_s12 }
  0xfa   :  { %11 = sbr.rel (!%p9_p5) target bundleno = 2 (0x2), region = 61 }

</bundles_post_ra>
